<compile_context>
chip_gen: v7x
topology: tpu7x:2x2x1
jax: 0.10.0
libtpu: 0.0.40
codegen_flags: <defaults>
</compile_context>

<pallas_src>
import math

import jax
import jax.numpy as jnp
import numpy as np
from jax import lax
from jax.experimental import pallas as pl
from jax.experimental.pallas import tpu as pltpu


# ----------------------------- small helpers -------------------------------
def _silu(x):
    return x * jax.nn.sigmoid(x)


def _softplus(x):
    # numerically-stable softplus (matches F.softplus semantics)
    return jnp.maximum(x, 0.0) + jnp.log1p(jnp.exp(-jnp.abs(x)))


# ------------------------------- the kernel --------------------------------
def mamba_layer_kernel(x_ref, gamma_ref, beta_ref, w_in_ref, w_conv_ref,
                       b_conv_ref, w_x_ref, w_dt_ref, b_dt_ref, a_neg_ref,
                       d_ref, w_out_ref, o_ref, dA_ref, dBu_ref):
    Bt, L, D = x_ref.shape
    d_conv, d_inner = w_conv_ref.shape
    n_state = a_neg_ref.shape[0]
    dt_rank = w_dt_ref.shape[0]
    M = Bt * L

    x = x_ref[...]                                           # (Bt, L, D)
    xf = x.reshape(M, D)                                     # flatten batch*seq

    # --- LayerNorm(d_model), eps=1e-5, over the flattened (Bt*L, D) slab ---
    mean = jnp.mean(xf, axis=-1, keepdims=True)
    var = jnp.mean((xf - mean) ** 2, axis=-1, keepdims=True)
    xn = (xf - mean) * lax.rsqrt(var + 1e-5)
    xn = xn * gamma_ref[...] + beta_ref[...]

    # --- fused in_proj: one (D, 2*d_inner) matmul with M = Bt*L rows ---
    xz = jnp.dot(xn, w_in_ref[...], preferred_element_type=jnp.float32)
    xc = xz[:, :d_inner]                                     # (M, d_inner)
    z = xz[:, d_inner:]                                      # (M, d_inner)

    # --- causal depthwise conv1d: single zero prefix + d_conv static taps ---
    # TODO(synk): pltpu.roll-based shifted adds (XLU) would avoid the sliced copies.
    xc3 = xc.reshape(Bt, L, d_inner)
    xpad = jnp.concatenate(
        [jnp.zeros((Bt, d_conv - 1, d_inner), jnp.float32), xc3], axis=1)
    conv = jnp.zeros((Bt, L, d_inner), jnp.float32)
    for k in range(d_conv):                                  # d_conv static & small
        conv = conv + xpad[:, k:k + L, :] * w_conv_ref[k:k + 1, :]
    xs_act = _silu(conv.reshape(M, d_inner) + b_conv_ref[...])   # (M, d_inner)

    # --- fused x_proj: one (d_inner, dt_rank + 2N) matmul, sliced afterwards ---
    x_dbl = jnp.dot(xs_act, w_x_ref[...], preferred_element_type=jnp.float32)
    d_low = x_dbl[:, :dt_rank]                               # (M, dt_rank)
    Bm = x_dbl[:, dt_rank:dt_rank + n_state]                 # (M, N)
    Cm = x_dbl[:, dt_rank + n_state:]                        # (M, N)

    # --- dt_proj as dt_rank rank-1 VPU FMAs (K tiny -> skip the MXU) ---
    dt_pre = d_low[:, 0:1] * w_dt_ref[0:1, :] + b_dt_ref[...]
    for r in range(1, dt_rank):
        dt_pre = dt_pre + d_low[:, r:r + 1] * w_dt_ref[r:r + 1, :]
    delta = _softplus(dt_pre)                                # (M, d_inner)
    du = delta * xs_act                                      # (M, d_inner)

    # --- vectorized precompute of scan inputs (exp amortized over full vregs) ---
    delta3 = delta.reshape(Bt, L, d_inner)
    du3 = du.reshape(Bt, L, d_inner)
    Bm3 = Bm.reshape(Bt, L, n_state)
    a_neg = a_neg_ref[...]                                   # (N, d_inner) = (-exp(A_log)).T
    dA_ref[...] = jnp.exp(delta3[:, :, None, :] * a_neg[None, None, :, :])
    dBu_ref[...] = Bm3[:, :, :, None] * du3[:, :, None, :]   # (Bt, L, N, d_inner)

    # --- serial scan: 2 VPU ops / step; state overwrites dBu[i] (dead data) ---
    def scan_body(i, state):
        state = (dA_ref[:, pl.ds(i, 1), :, :] * state
                 + dBu_ref[:, pl.ds(i, 1), :, :])
        dBu_ref[:, pl.ds(i, 1), :, :] = state
        return state

    lax.fori_loop(0, L, scan_body,
                  jnp.zeros((Bt, 1, n_state, d_inner), jnp.float32),
                  unroll=min(8, L))

    # --- deferred, vectorized C-readout over the whole state buffer (no MXU) ---
    st = dBu_ref[...]                                        # (Bt, L, N, d_inner)
    y3 = jnp.sum(Cm.reshape(Bt, L, n_state)[:, :, :, None] * st, axis=2)

    y = y3.reshape(M, d_inner) + xs_act * d_ref[...]         # skip term (D parameter)
    y = y * _silu(z)                                         # gate
    out = jnp.dot(y, w_out_ref[...], preferred_element_type=jnp.float32)  # (M, D)

    o_ref[...] = (x + out.reshape(Bt, L, D)).astype(o_ref.dtype)  # residual add


# ------------------------------ the wrapper --------------------------------
def _const_spec(arr):
    # Whole-array block with a constant index map: fetched once, kept resident.
    nd = arr.ndim
    return pl.BlockSpec(arr.shape, lambda b, _nd=nd: (0,) * _nd)


def _pick_block_batch(B, L, target_rows=256):
    # Largest divisor Bt of B with Bt*L <= target_rows (fills the MXU M dim
    # without blowing up the per-step scan scratch).
    best = 1
    for bt in range(1, B + 1):
        if B % bt == 0 and bt * L <= target_rows:
            best = bt
    return best


def mamba_layer_forward(x, params):
    B, L, D = x.shape
    (gamma, beta, w_in, w_conv, b_conv, w_x, w_dt, b_dt, a_neg, d_param,
     w_out) = params
    d_conv, d_inner = w_conv.shape
    n_state = a_neg.shape[0]
    Bt = _pick_block_batch(B, L)

    in_specs = [pl.BlockSpec((Bt, L, D), lambda b: (b, 0, 0))]
    in_specs += [_const_spec(p) for p in params]

    # TODO(synk): for very long L on v7x (64 MiB VMEM) chunk the scan scratches
    # over L, carrying the last d_conv-1 conv rows and the (N,d_inner) state.
    scratch_shapes = [
        pltpu.VMEM((Bt, L, n_state, d_inner), jnp.float32),   # dA = exp(delta * A)
        pltpu.VMEM((Bt, L, n_state, d_inner), jnp.float32),   # dB*u, then per-step states
    ]

    return pl.pallas_call(
        mamba_layer_kernel,
        out_shape=jax.ShapeDtypeStruct((B, L, D), x.dtype),
        grid=(B // Bt,),
        in_specs=in_specs,
        out_specs=pl.BlockSpec((Bt, L, D), lambda b: (b, 0, 0)),
        scratch_shapes=scratch_shapes,
        compiler_params=pltpu.CompilerParams(
            dimension_semantics=("parallel",),
            vmem_limit_bytes=64 * 1024 * 1024),
    )(x, *params)


def cardio_mamba_forward(xs, intra_params, inter_params):
    """xs: list of (B, Li, D) arrays. Returns list of (B, Li, D) arrays."""
    x_intra = [mamba_layer_forward(x_in, p) for x_in, p in zip(xs, intra_params)]
    if inter_params is None:
        return x_intra
    routers = jnp.concatenate([xi[:, -1:, :] for xi in x_intra], axis=1)  # (B, nb, D)
    x_inter = mamba_layer_forward(routers, inter_params)
    x_out = [jnp.concatenate([xi[:, :-1, :], x_inter[:, i:i + 1, :]], axis=1)
             for i, xi in enumerate(x_intra)]
    return x_out
    # TODO(synk): nn.Dropout(0.1) is defined in the PyTorch module but never applied
    # in forward(); attn outputs are always None, so they are omitted here.


# ------------------------ deterministic parameter init ----------------------
def init_mamba_params(key, d_model, d_state=16, d_conv=4, expand=2,
                      dt_min=0.001, dt_max=0.1):
    d_inner = int(expand * d_model)
    dt_rank = math.ceil(d_model / 16)
    ks = jax.random.split(key, 8)

    def lin(k, fan_in, shape):
        bound = 1.0 / math.sqrt(fan_in)
        return jax.random.uniform(k, shape, jnp.float32, -bound, bound)

    gamma = jnp.ones((1, d_model), jnp.float32)
    beta = jnp.zeros((1, d_model), jnp.float32)
    w_in = lin(ks[0], d_model, (d_model, 2 * d_inner))            # fused x|z proj
    w_conv = lin(ks[1], d_conv, (d_conv, d_inner))                # depthwise taps
    b_conv = lin(ks[2], d_conv, (1, d_inner))
    w_x = lin(ks[3], d_inner, (d_inner, dt_rank + 2 * d_state))   # fused dt|B|C proj
    w_dt = lin(ks[4], dt_rank, (dt_rank, d_inner))
    dt = jnp.exp(jax.random.uniform(ks[5], (d_inner,), jnp.float32)
                 * (math.log(dt_max) - math.log(dt_min)) + math.log(dt_min))
    dt = jnp.maximum(dt, dt_min)
    b_dt = (dt + jnp.log(-jnp.expm1(-dt))).reshape(1, d_inner)    # inv_dt bias
    # A_log = log(arange(1..N)) broadcast over d_inner, stored transposed (N, d_inner);
    # the constant -exp(A_log) is hoisted out of the kernel.
    a_log = jnp.log(jnp.tile(jnp.arange(1, d_state + 1, dtype=jnp.float32)[:, None],
                             (1, d_inner)))
    a_neg = -jnp.exp(a_log)                                       # (N, d_inner)
    d_param = jnp.ones((1, d_inner), jnp.float32)
    w_out = lin(ks[6], d_inner, (d_inner, d_model))
    return [gamma, beta, w_in, w_conv, b_conv, w_x, w_dt, b_dt, a_neg, d_param,
            w_out]


# ---------------------------- pure-JAX reference ----------------------------
def mamba_layer_ref(x, p):
    (gamma, beta, w_in, w_conv, b_conv, w_x, w_dt, b_dt, a_neg, d_param,
     w_out) = p
    Bsz, L, D = x.shape
    d_conv, d_inner = w_conv.shape
    n_state = a_neg.shape[0]
    dt_rank = w_dt.shape[0]

    mean = x.mean(-1, keepdims=True)
    var = ((x - mean) ** 2).mean(-1, keepdims=True)
    xn = (x - mean) / jnp.sqrt(var + 1e-5) * gamma[0] + beta[0]
    xz = xn @ w_in
    xc, z = xz[..., :d_inner], xz[..., d_inner:]
    xpad = jnp.pad(xc, ((0, 0), (d_conv - 1, 0), (0, 0)))
    conv = sum(xpad[:, k:k + L, :] * w_conv[k] for k in range(d_conv)) + b_conv[0]
    xs = conv * jax.nn.sigmoid(conv)
    x_dbl = xs @ w_x
    d_low = x_dbl[..., :dt_rank]
    Bm = x_dbl[..., dt_rank:dt_rank + n_state]
    Cm = x_dbl[..., dt_rank + n_state:]
    delta = _softplus(d_low @ w_dt + b_dt[0])
    A = a_neg.T                                             # (d_inner, N)
    dA = jnp.exp(jnp.einsum('bld,dn->bldn', delta, A))
    dBu = jnp.einsum('bld,bln,bld->bldn', delta, Bm, xs)

    def step(state, inp):
        dA_i, dBu_i, C_i = inp
        state = dA_i * state + dBu_i
        return state, jnp.einsum('bdn,bn->bd', state, C_i)

    state0 = jnp.zeros((Bsz, d_inner, n_state), jnp.float32)
    _, ys = lax.scan(step, state0,
                     (dA.transpose(1, 0, 2, 3), dBu.transpose(1, 0, 2, 3),
                      Cm.transpose(1, 0, 2)))
    y = ys.transpose(1, 0, 2)
    y = y + xs * d_param[0]
    y = y * (z * jax.nn.sigmoid(z))
    return x + y @ w_out


def cardio_ref(xs, intra_params, inter_params):
    x_intra = [mamba_layer_ref(x_in, p) for x_in, p in zip(xs, intra_params)]
    if inter_params is None:
        return x_intra
    routers = jnp.concatenate([xi[:, -1:, :] for xi in x_intra], axis=1)
    x_inter = mamba_layer_ref(routers, inter_params)
    return [jnp.concatenate([xi[:, :-1, :], x_inter[:, i:i + 1, :]], axis=1)
            for i, xi in enumerate(x_intra)]


# ----------------------------------- main -----------------------------------
if __name__ == "__main__":
    num_blocks = 2
    B, L, d_model = 2, 8, 32
    d_state, d_conv, expand = 16, 4, 2

    root = jax.random.PRNGKey(0)
    k_in, k_intra, k_inter = jax.random.split(root, 3)

    xs = [jax.random.normal(k, (B, L, d_model), jnp.float32)
          for k in jax.random.split(k_in, num_blocks)]
    intra_params = [init_mamba_params(k, d_model, d_state, d_conv, expand)
                    for k in jax.random.split(k_intra, num_blocks)]
    inter_params = init_mamba_params(k_inter, d_model, d_state, d_conv, expand)

    out = cardio_mamba_forward(xs, intra_params, inter_params)
    for o in out:
        jax.block_until_ready(o)

    ref = cardio_ref(xs, intra_params, inter_params)
    for o, r in zip(out, ref):
        np.testing.assert_allclose(np.asarray(o), np.asarray(r),
                                   rtol=2e-4, atol=2e-4)

    print("KERNEL_OK")
</pallas_src>

<mosaic_0001>
module attributes {stable_mosaic.version = 11 : i64} {
  func.func @mamba_layer_kernel(%arg0: i32, %arg1: memref<2x8x32xf32, #tpu.memory_space<vmem>>, %arg2: memref<1x32xf32, #tpu.memory_space<vmem>>, %arg3: memref<1x32xf32, #tpu.memory_space<vmem>>, %arg4: memref<32x128xf32, #tpu.memory_space<vmem>>, %arg5: memref<4x64xf32, #tpu.memory_space<vmem>>, %arg6: memref<1x64xf32, #tpu.memory_space<vmem>>, %arg7: memref<64x34xf32, #tpu.memory_space<vmem>>, %arg8: memref<2x64xf32, #tpu.memory_space<vmem>>, %arg9: memref<1x64xf32, #tpu.memory_space<vmem>>, %arg10: memref<16x64xf32, #tpu.memory_space<vmem>>, %arg11: memref<1x64xf32, #tpu.memory_space<vmem>>, %arg12: memref<64x32xf32, #tpu.memory_space<vmem>>, %arg13: memref<2x8x32xf32, #tpu.memory_space<vmem>>, %arg14: memref<2x8x16x64xf32, #tpu.memory_space<vmem>>, %arg15: memref<2x8x16x64xf32, #tpu.memory_space<vmem>>) attributes {dimension_semantics = [#tpu.dimension_semantics<parallel>], iteration_bounds = array<i64: 1>, scalar_prefetch = 0 : i64, scratch_operands = 2 : i64, tpu.core_type = #tpu.core_type<tc>, window_params = [{transform_indices = @transform_0, window_bounds = array<i64: 2, 8, 32>}, {pipeline_mode = #tpu.pipeline_mode<synchronous>, transform_indices = @transform_1, window_bounds = array<i64: 1, 32>}, {pipeline_mode = #tpu.pipeline_mode<synchronous>, transform_indices = @transform_2, window_bounds = array<i64: 1, 32>}, {pipeline_mode = #tpu.pipeline_mode<synchronous>, transform_indices = @transform_3, window_bounds = array<i64: 32, 128>}, {pipeline_mode = #tpu.pipeline_mode<synchronous>, transform_indices = @transform_4, window_bounds = array<i64: 4, 64>}, {pipeline_mode = #tpu.pipeline_mode<synchronous>, transform_indices = @transform_5, window_bounds = array<i64: 1, 64>}, {pipeline_mode = #tpu.pipeline_mode<synchronous>, transform_indices = @transform_6, window_bounds = array<i64: 64, 34>}, {pipeline_mode = #tpu.pipeline_mode<synchronous>, transform_indices = @transform_7, window_bounds = array<i64: 2, 64>}, {pipeline_mode = #tpu.pipeline_mode<synchronous>, transform_indices = @transform_8, window_bounds = array<i64: 1, 64>}, {pipeline_mode = #tpu.pipeline_mode<synchronous>, transform_indices = @transform_9, window_bounds = array<i64: 16, 64>}, {pipeline_mode = #tpu.pipeline_mode<synchronous>, transform_indices = @transform_10, window_bounds = array<i64: 1, 64>}, {pipeline_mode = #tpu.pipeline_mode<synchronous>, transform_indices = @transform_11, window_bounds = array<i64: 64, 32>}, {transform_indices = @transform_12, window_bounds = array<i64: 2, 8, 32>}]} {
    %c0 = arith.constant 0 : index
    %c0_0 = arith.constant 0 : index
    %c0_1 = arith.constant 0 : index
    %0 = vector.load %arg1[%c0, %c0_0, %c0_1] : memref<2x8x32xf32, #tpu.memory_space<vmem>>, vector<2x8x32xf32>
    %1 = vector.shape_cast %0 : vector<2x8x32xf32> to vector<16x32xf32>
    %cst = arith.constant dense<0.000000e+00> : vector<16xf32>
    %2 = vector.multi_reduction <add>, %1, %cst [1] : vector<16x32xf32> to vector<16xf32>
    %3 = vector.shape_cast %2 : vector<16xf32> to vector<16x1xf32>
    %cst_2 = arith.constant 3.200000e+01 : f32
    %4 = vector.broadcast %cst_2 : f32 to vector<16x1xf32>
    %5 = arith.divf %3, %4 : vector<16x1xf32>
    %6 = vector.broadcast %5 : vector<16x1xf32> to vector<16x32xf32>
    %7 = arith.subf %1, %6 : vector<16x32xf32>
    %8 = arith.mulf %7, %7 : vector<16x32xf32>
    %cst_3 = arith.constant dense<0.000000e+00> : vector<16xf32>
    %9 = vector.multi_reduction <add>, %8, %cst_3 [1] : vector<16x32xf32> to vector<16xf32>
    %10 = vector.shape_cast %9 : vector<16xf32> to vector<16x1xf32>
    %cst_4 = arith.constant 3.200000e+01 : f32
    %11 = vector.broadcast %cst_4 : f32 to vector<16x1xf32>
    %12 = arith.divf %10, %11 : vector<16x1xf32>
    %13 = vector.broadcast %5 : vector<16x1xf32> to vector<16x32xf32>
    %14 = arith.subf %1, %13 : vector<16x32xf32>
    %cst_5 = arith.constant 9.99999974E-6 : f32
    %15 = vector.broadcast %cst_5 : f32 to vector<16x1xf32>
    %16 = arith.addf %12, %15 : vector<16x1xf32>
    %17 = math.rsqrt %16 : vector<16x1xf32>
    %18 = vector.broadcast %17 : vector<16x1xf32> to vector<16x32xf32>
    %19 = arith.mulf %14, %18 : vector<16x32xf32>
    %c0_6 = arith.constant 0 : index
    %c0_7 = arith.constant 0 : index
    %20 = vector.load %arg2[%c0_6, %c0_7] : memref<1x32xf32, #tpu.memory_space<vmem>>, vector<1x32xf32>
    %21 = vector.broadcast %20 : vector<1x32xf32> to vector<16x32xf32>
    %22 = arith.mulf %19, %21 : vector<16x32xf32>
    %c0_8 = arith.constant 0 : index
    %c0_9 = arith.constant 0 : index
    %23 = vector.load %arg3[%c0_8, %c0_9] : memref<1x32xf32, #tpu.memory_space<vmem>>, vector<1x32xf32>
    %24 = vector.broadcast %23 : vector<1x32xf32> to vector<16x32xf32>
    %25 = arith.addf %22, %24 : vector<16x32xf32>
    %c0_10 = arith.constant 0 : index
    %c0_11 = arith.constant 0 : index
    %26 = vector.load %arg4[%c0_10, %c0_11] : memref<32x128xf32, #tpu.memory_space<vmem>>, vector<32x128xf32>
    %cst_12 = arith.constant dense<0.000000e+00> : vector<16x128xf32>
    %27 = tpu.matmul %25, %26, %cst_12 {dimension_numbers = #tpu.dot_dimension_numbers<[1], [0], [0], [1], [0, 0, 1, 1], [], []>} : vector<16x32xf32>, vector<32x128xf32>, vector<16x128xf32> -> vector<16x128xf32>
    %28 = vector.extract_strided_slice %27 {offsets = [0, 0], sizes = [16, 64], strides = [1, 1]} : vector<16x128xf32> to vector<16x64xf32>
    %29 = vector.extract_strided_slice %27 {offsets = [0, 64], sizes = [16, 64], strides = [1, 1]} : vector<16x128xf32> to vector<16x64xf32>
    %30 = vector.shape_cast %28 : vector<16x64xf32> to vector<2x8x64xf32>
    %cst_13 = arith.constant 0.000000e+00 : f32
    %31 = vector.broadcast %cst_13 : f32 to vector<2x3x64xf32>
    %32 = tpu.concatenate %31, %30 in 1 : vector<2x3x64xf32>, vector<2x8x64xf32> -> vector<2x11x64xf32>
    %cst_14 = arith.constant 0.000000e+00 : f32
    %33 = vector.broadcast %cst_14 : f32 to vector<2x8x64xf32>
    %34 = vector.extract_strided_slice %32 {offsets = [0, 0, 0], sizes = [2, 8, 64], strides = [1, 1, 1]} : vector<2x11x64xf32> to vector<2x8x64xf32>
    %c0_15 = arith.constant 0 : index
    %c0_16 = arith.constant 0 : index
    %35 = vector.load %arg5[%c0_15, %c0_16] : memref<4x64xf32, #tpu.memory_space<vmem>>, vector<1x64xf32>
    %36 = vector.shape_cast %35 : vector<1x64xf32> to vector<1x1x64xf32>
    %37 = vector.broadcast %36 : vector<1x1x64xf32> to vector<2x8x64xf32>
    %38 = arith.mulf %34, %37 : vector<2x8x64xf32>
    %39 = arith.addf %33, %38 : vector<2x8x64xf32>
    %40 = vector.extract_strided_slice %32 {offsets = [0, 1, 0], sizes = [2, 8, 64], strides = [1, 1, 1]} : vector<2x11x64xf32> to vector<2x8x64xf32>
    %c1 = arith.constant 1 : index
    %c0_17 = arith.constant 0 : index
    %41 = vector.load %arg5[%c1, %c0_17] : memref<4x64xf32, #tpu.memory_space<vmem>>, vector<1x64xf32>
    %42 = vector.shape_cast %41 : vector<1x64xf32> to vector<1x1x64xf32>
    %43 = vector.broadcast %42 : vector<1x1x64xf32> to vector<2x8x64xf32>
    %44 = arith.mulf %40, %43 : vector<2x8x64xf32>
    %45 = arith.addf %39, %44 : vector<2x8x64xf32>
    %46 = vector.extract_strided_slice %32 {offsets = [0, 2, 0], sizes = [2, 8, 64], strides = [1, 1, 1]} : vector<2x11x64xf32> to vector<2x8x64xf32>
    %c2 = arith.constant 2 : index
    %c0_18 = arith.constant 0 : index
    %47 = vector.load %arg5[%c2, %c0_18] : memref<4x64xf32, #tpu.memory_space<vmem>>, vector<1x64xf32>
    %48 = vector.shape_cast %47 : vector<1x64xf32> to vector<1x1x64xf32>
    %49 = vector.broadcast %48 : vector<1x1x64xf32> to vector<2x8x64xf32>
    %50 = arith.mulf %46, %49 : vector<2x8x64xf32>
    %51 = arith.addf %45, %50 : vector<2x8x64xf32>
    %52 = vector.extract_strided_slice %32 {offsets = [0, 3, 0], sizes = [2, 8, 64], strides = [1, 1, 1]} : vector<2x11x64xf32> to vector<2x8x64xf32>
    %c3 = arith.constant 3 : index
    %c0_19 = arith.constant 0 : index
    %53 = vector.load %arg5[%c3, %c0_19] : memref<4x64xf32, #tpu.memory_space<vmem>>, vector<1x64xf32>
    %54 = vector.shape_cast %53 : vector<1x64xf32> to vector<1x1x64xf32>
    %55 = vector.broadcast %54 : vector<1x1x64xf32> to vector<2x8x64xf32>
    %56 = arith.mulf %52, %55 : vector<2x8x64xf32>
    %57 = arith.addf %51, %56 : vector<2x8x64xf32>
    %58 = vector.shape_cast %57 : vector<2x8x64xf32> to vector<16x64xf32>
    %c0_20 = arith.constant 0 : index
    %c0_21 = arith.constant 0 : index
    %59 = vector.load %arg6[%c0_20, %c0_21] : memref<1x64xf32, #tpu.memory_space<vmem>>, vector<1x64xf32>
    %60 = vector.broadcast %59 : vector<1x64xf32> to vector<16x64xf32>
    %61 = arith.addf %58, %60 : vector<16x64xf32>
    %62 = arith.negf %61 : vector<16x64xf32>
    %63 = math.exp %62 : vector<16x64xf32>
    %cst_22 = arith.constant 1.000000e+00 : f32
    %64 = vector.broadcast %cst_22 : f32 to vector<16x64xf32>
    %65 = arith.addf %64, %63 : vector<16x64xf32>
    %66 = arith.divf %64, %65 : vector<16x64xf32>
    %67 = arith.mulf %61, %66 : vector<16x64xf32>
    %c0_23 = arith.constant 0 : index
    %c0_24 = arith.constant 0 : index
    %68 = vector.load %arg7[%c0_23, %c0_24] : memref<64x34xf32, #tpu.memory_space<vmem>>, vector<64x34xf32>
    %cst_25 = arith.constant dense<0.000000e+00> : vector<16x34xf32>
    %69 = tpu.matmul %67, %68, %cst_25 {dimension_numbers = #tpu.dot_dimension_numbers<[1], [0], [0], [1], [0, 0, 1, 1], [], []>} : vector<16x64xf32>, vector<64x34xf32>, vector<16x34xf32> -> vector<16x34xf32>
    %70 = vector.extract_strided_slice %69 {offsets = [0, 0], sizes = [16, 2], strides = [1, 1]} : vector<16x34xf32> to vector<16x2xf32>
    %71 = vector.extract_strided_slice %69 {offsets = [0, 2], sizes = [16, 16], strides = [1, 1]} : vector<16x34xf32> to vector<16x16xf32>
    %72 = vector.extract_strided_slice %69 {offsets = [0, 18], sizes = [16, 16], strides = [1, 1]} : vector<16x34xf32> to vector<16x16xf32>
    %73 = vector.extract_strided_slice %70 {offsets = [0, 0], sizes = [16, 1], strides = [1, 1]} : vector<16x2xf32> to vector<16x1xf32>
    %c0_26 = arith.constant 0 : index
    %c0_27 = arith.constant 0 : index
    %74 = vector.load %arg8[%c0_26, %c0_27] : memref<2x64xf32, #tpu.memory_space<vmem>>, vector<1x64xf32>
    %75 = vector.broadcast %73 : vector<16x1xf32> to vector<16x64xf32>
    %76 = vector.broadcast %74 : vector<1x64xf32> to vector<16x64xf32>
    %77 = arith.mulf %75, %76 : vector<16x64xf32>
    %c0_28 = arith.constant 0 : index
    %c0_29 = arith.constant 0 : index
    %78 = vector.load %arg9[%c0_28, %c0_29] : memref<1x64xf32, #tpu.memory_space<vmem>>, vector<1x64xf32>
    %79 = vector.broadcast %78 : vector<1x64xf32> to vector<16x64xf32>
    %80 = arith.addf %77, %79 : vector<16x64xf32>
    %81 = vector.extract_strided_slice %70 {offsets = [0, 1], sizes = [16, 1], strides = [1, 1]} : vector<16x2xf32> to vector<16x1xf32>
    %c1_30 = arith.constant 1 : index
    %c0_31 = arith.constant 0 : index
    %82 = vector.load %arg8[%c1_30, %c0_31] : memref<2x64xf32, #tpu.memory_space<vmem>>, vector<1x64xf32>
    %83 = vector.broadcast %81 : vector<16x1xf32> to vector<16x64xf32>
    %84 = vector.broadcast %82 : vector<1x64xf32> to vector<16x64xf32>
    %85 = arith.mulf %83, %84 : vector<16x64xf32>
    %86 = arith.addf %80, %85 : vector<16x64xf32>
    %cst_32 = arith.constant 0.000000e+00 : f32
    %87 = vector.broadcast %cst_32 : f32 to vector<16x64xf32>
    %88 = arith.maximumf %86, %87 : vector<16x64xf32>
    %89 = math.absf %86 : vector<16x64xf32>
    %cst_33 = arith.constant 0.000000e+00 : f32
    %90 = vector.broadcast %cst_33 : f32 to vector<16x64xf32>
    %91 = arith.subf %90, %89 : vector<16x64xf32>
    %92 = math.exp %91 : vector<16x64xf32>
    %93 = math.log1p %92 : vector<16x64xf32>
    %94 = arith.addf %88, %93 : vector<16x64xf32>
    %95 = arith.mulf %94, %67 : vector<16x64xf32>
    %96 = vector.shape_cast %94 : vector<16x64xf32> to vector<2x8x64xf32>
    %97 = vector.shape_cast %95 : vector<16x64xf32> to vector<2x8x64xf32>
    %98 = vector.shape_cast %71 : vector<16x16xf32> to vector<2x8x16xf32>
    %c0_34 = arith.constant 0 : index
    %c0_35 = arith.constant 0 : index
    %99 = vector.load %arg10[%c0_34, %c0_35] : memref<16x64xf32, #tpu.memory_space<vmem>>, vector<16x64xf32>
    %100 = vector.shape_cast %96 : vector<2x8x64xf32> to vector<2x8x1x64xf32>
    %101 = vector.shape_cast %99 : vector<16x64xf32> to vector<1x1x16x64xf32>
    %102 = vector.broadcast %100 : vector<2x8x1x64xf32> to vector<2x8x16x64xf32>
    %103 = vector.broadcast %101 : vector<1x1x16x64xf32> to vector<2x8x16x64xf32>
    %104 = arith.mulf %102, %103 : vector<2x8x16x64xf32>
    %105 = math.exp %104 : vector<2x8x16x64xf32>
    %c0_36 = arith.constant 0 : index
    %c0_37 = arith.constant 0 : index
    %c0_38 = arith.constant 0 : index
    %c0_39 = arith.constant 0 : index
    %106 = vector.load %arg14[%c0_36, %c0_37, %c0_38, %c0_39] : memref<2x8x16x64xf32, #tpu.memory_space<vmem>>, vector<2x8x16x64xf32>
    tpu.vector_store %arg14[%c0_36, %c0_37, %c0_38, %c0_39], %105 {strides = array<i32>} : memref<2x8x16x64xf32, #tpu.memory_space<vmem>>, vector<2x8x16x64xf32>,
    %107 = vector.shape_cast %98 : vector<2x8x16xf32> to vector<2x8x16x1xf32>
    %108 = vector.shape_cast %97 : vector<2x8x64xf32> to vector<2x8x1x64xf32>
    %109 = vector.broadcast %107 : vector<2x8x16x1xf32> to vector<2x8x16x64xf32>
    %110 = vector.broadcast %108 : vector<2x8x1x64xf32> to vector<2x8x16x64xf32>
    %111 = arith.mulf %109, %110 : vector<2x8x16x64xf32>
    %c0_40 = arith.constant 0 : index
    %c0_41 = arith.constant 0 : index
    %c0_42 = arith.constant 0 : index
    %c0_43 = arith.constant 0 : index
    %112 = vector.load %arg15[%c0_40, %c0_41, %c0_42, %c0_43] : memref<2x8x16x64xf32, #tpu.memory_space<vmem>>, vector<2x8x16x64xf32>
    tpu.vector_store %arg15[%c0_40, %c0_41, %c0_42, %c0_43], %111 {strides = array<i32>} : memref<2x8x16x64xf32, #tpu.memory_space<vmem>>, vector<2x8x16x64xf32>,
    %cst_44 = arith.constant 0.000000e+00 : f32
    %113 = vector.broadcast %cst_44 : f32 to vector<2x1x16x64xf32>
    %c0_i32 = arith.constant 0 : i32
    %c0_45 = arith.constant 0 : index
    %114 = arith.index_cast %c0_i32 : i32 to index
    %c0_46 = arith.constant 0 : index
    %c0_47 = arith.constant 0 : index
    %115 = vector.load %arg14[%c0_45, %114, %c0_46, %c0_47] : memref<2x8x16x64xf32, #tpu.memory_space<vmem>>, vector<2x1x16x64xf32>
    %116 = arith.mulf %115, %113 : vector<2x1x16x64xf32>
    %c0_48 = arith.constant 0 : index
    %117 = arith.index_cast %c0_i32 : i32 to index
    %c0_49 = arith.constant 0 : index
    %c0_50 = arith.constant 0 : index
    %118 = vector.load %arg15[%c0_48, %117, %c0_49, %c0_50] : memref<2x8x16x64xf32, #tpu.memory_space<vmem>>, vector<2x1x16x64xf32>
    %119 = arith.addf %116, %118 : vector<2x1x16x64xf32>
    %c0_51 = arith.constant 0 : index
    %120 = arith.index_cast %c0_i32 : i32 to index
    %c0_52 = arith.constant 0 : index
    %c0_53 = arith.constant 0 : index
    %121 = vector.load %arg15[%c0_51, %120, %c0_52, %c0_53] : memref<2x8x16x64xf32, #tpu.memory_space<vmem>>, vector<2x1x16x64xf32>
    tpu.vector_store %arg15[%c0_51, %120, %c0_52, %c0_53], %119 {strides = array<i32>} : memref<2x8x16x64xf32, #tpu.memory_space<vmem>>, vector<2x1x16x64xf32>,
    %c1_i32 = arith.constant 1 : i32
    %c0_54 = arith.constant 0 : index
    %122 = arith.index_cast %c1_i32 : i32 to index
    %c0_55 = arith.constant 0 : index
    %c0_56 = arith.constant 0 : index
    %123 = vector.load %arg14[%c0_54, %122, %c0_55, %c0_56] : memref<2x8x16x64xf32, #tpu.memory_space<vmem>>, vector<2x1x16x64xf32>
    %124 = arith.mulf %123, %119 : vector<2x1x16x64xf32>
    %c0_57 = arith.constant 0 : index
    %125 = arith.index_cast %c1_i32 : i32 to index
    %c0_58 = arith.constant 0 : index
    %c0_59 = arith.constant 0 : index
    %126 = vector.load %arg15[%c0_57, %125, %c0_58, %c0_59] : memref<2x8x16x64xf32, #tpu.memory_space<vmem>>, vector<2x1x16x64xf32>
    %127 = arith.addf %124, %126 : vector<2x1x16x64xf32>
    %c0_60 = arith.constant 0 : index
    %128 = arith.index_cast %c1_i32 : i32 to index
    %c0_61 = arith.constant 0 : index
    %c0_62 = arith.constant 0 : index
    %129 = vector.load %arg15[%c0_60, %128, %c0_61, %c0_62] : memref<2x8x16x64xf32, #tpu.memory_space<vmem>>, vector<2x1x16x64xf32>
    tpu.vector_store %arg15[%c0_60, %128, %c0_61, %c0_62], %127 {strides = array<i32>} : memref<2x8x16x64xf32, #tpu.memory_space<vmem>>, vector<2x1x16x64xf32>,
    %c2_i32 = arith.constant 2 : i32
    %c0_63 = arith.constant 0 : index
    %130 = arith.index_cast %c2_i32 : i32 to index
    %c0_64 = arith.constant 0 : index
    %c0_65 = arith.constant 0 : index
    %131 = vector.load %arg14[%c0_63, %130, %c0_64, %c0_65] : memref<2x8x16x64xf32, #tpu.memory_space<vmem>>, vector<2x1x16x64xf32>
    %132 = arith.mulf %131, %127 : vector<2x1x16x64xf32>
    %c0_66 = arith.constant 0 : index
    %133 = arith.index_cast %c2_i32 : i32 to index
    %c0_67 = arith.constant 0 : index
    %c0_68 = arith.constant 0 : index
    %134 = vector.load %arg15[%c0_66, %133, %c0_67, %c0_68] : memref<2x8x16x64xf32, #tpu.memory_space<vmem>>, vector<2x1x16x64xf32>
    %135 = arith.addf %132, %134 : vector<2x1x16x64xf32>
    %c0_69 = arith.constant 0 : index
    %136 = arith.index_cast %c2_i32 : i32 to index
    %c0_70 = arith.constant 0 : index
    %c0_71 = arith.constant 0 : index
    %137 = vector.load %arg15[%c0_69, %136, %c0_70, %c0_71] : memref<2x8x16x64xf32, #tpu.memory_space<vmem>>, vector<2x1x16x64xf32>
    tpu.vector_store %arg15[%c0_69, %136, %c0_70, %c0_71], %135 {strides = array<i32>} : memref<2x8x16x64xf32, #tpu.memory_space<vmem>>, vector<2x1x16x64xf32>,
    %c3_i32 = arith.constant 3 : i32
    %c0_72 = arith.constant 0 : index
    %138 = arith.index_cast %c3_i32 : i32 to index
    %c0_73 = arith.constant 0 : index
    %c0_74 = arith.constant 0 : index
    %139 = vector.load %arg14[%c0_72, %138, %c0_73, %c0_74] : memref<2x8x16x64xf32, #tpu.memory_space<vmem>>, vector<2x1x16x64xf32>
    %140 = arith.mulf %139, %135 : vector<2x1x16x64xf32>
    %c0_75 = arith.constant 0 : index
    %141 = arith.index_cast %c3_i32 : i32 to index
    %c0_76 = arith.constant 0 : index
    %c0_77 = arith.constant 0 : index
    %142 = vector.load %arg15[%c0_75, %141, %c0_76, %c0_77] : memref<2x8x16x64xf32, #tpu.memory_space<vmem>>, vector<2x1x16x64xf32>
    %143 = arith.addf %140, %142 : vector<2x1x16x64xf32>
    %c0_78 = arith.constant 0 : index
    %144 = arith.index_cast %c3_i32 : i32 to index
    %c0_79 = arith.constant 0 : index
    %c0_80 = arith.constant 0 : index
    %145 = vector.load %arg15[%c0_78, %144, %c0_79, %c0_80] : memref<2x8x16x64xf32, #tpu.memory_space<vmem>>, vector<2x1x16x64xf32>
    tpu.vector_store %arg15[%c0_78, %144, %c0_79, %c0_80], %143 {strides = array<i32>} : memref<2x8x16x64xf32, #tpu.memory_space<vmem>>, vector<2x1x16x64xf32>,
    %c4_i32 = arith.constant 4 : i32
    %c0_81 = arith.constant 0 : index
    %146 = arith.index_cast %c4_i32 : i32 to index
    %c0_82 = arith.constant 0 : index
    %c0_83 = arith.constant 0 : index
    %147 = vector.load %arg14[%c0_81, %146, %c0_82, %c0_83] : memref<2x8x16x64xf32, #tpu.memory_space<vmem>>, vector<2x1x16x64xf32>
    %148 = arith.mulf %147, %143 : vector<2x1x16x64xf32>
    %c0_84 = arith.constant 0 : index
    %149 = arith.index_cast %c4_i32 : i32 to index
    %c0_85 = arith.constant 0 : index
    %c0_86 = arith.constant 0 : index
    %150 = vector.load %arg15[%c0_84, %149, %c0_85, %c0_86] : memref<2x8x16x64xf32, #tpu.memory_space<vmem>>, vector<2x1x16x64xf32>
    %151 = arith.addf %148, %150 : vector<2x1x16x64xf32>
    %c0_87 = arith.constant 0 : index
    %152 = arith.index_cast %c4_i32 : i32 to index
    %c0_88 = arith.constant 0 : index
    %c0_89 = arith.constant 0 : index
    %153 = vector.load %arg15[%c0_87, %152, %c0_88, %c0_89] : memref<2x8x16x64xf32, #tpu.memory_space<vmem>>, vector<2x1x16x64xf32>
    tpu.vector_store %arg15[%c0_87, %152, %c0_88, %c0_89], %151 {strides = array<i32>} : memref<2x8x16x64xf32, #tpu.memory_space<vmem>>, vector<2x1x16x64xf32>,
    %c5_i32 = arith.constant 5 : i32
    %c0_90 = arith.constant 0 : index
    %154 = arith.index_cast %c5_i32 : i32 to index
    %c0_91 = arith.constant 0 : index
    %c0_92 = arith.constant 0 : index
    %155 = vector.load %arg14[%c0_90, %154, %c0_91, %c0_92] : memref<2x8x16x64xf32, #tpu.memory_space<vmem>>, vector<2x1x16x64xf32>
    %156 = arith.mulf %155, %151 : vector<2x1x16x64xf32>
    %c0_93 = arith.constant 0 : index
    %157 = arith.index_cast %c5_i32 : i32 to index
    %c0_94 = arith.constant 0 : index
    %c0_95 = arith.constant 0 : index
    %158 = vector.load %arg15[%c0_93, %157, %c0_94, %c0_95] : memref<2x8x16x64xf32, #tpu.memory_space<vmem>>, vector<2x1x16x64xf32>
    %159 = arith.addf %156, %158 : vector<2x1x16x64xf32>
    %c0_96 = arith.constant 0 : index
    %160 = arith.index_cast %c5_i32 : i32 to index
    %c0_97 = arith.constant 0 : index
    %c0_98 = arith.constant 0 : index
    %161 = vector.load %arg15[%c0_96, %160, %c0_97, %c0_98] : memref<2x8x16x64xf32, #tpu.memory_space<vmem>>, vector<2x1x16x64xf32>
    tpu.vector_store %arg15[%c0_96, %160, %c0_97, %c0_98], %159 {strides = array<i32>} : memref<2x8x16x64xf32, #tpu.memory_space<vmem>>, vector<2x1x16x64xf32>,
    %c6_i32 = arith.constant 6 : i32
    %c0_99 = arith.constant 0 : index
    %162 = arith.index_cast %c6_i32 : i32 to index
    %c0_100 = arith.constant 0 : index
    %c0_101 = arith.constant 0 : index
    %163 = vector.load %arg14[%c0_99, %162, %c0_100, %c0_101] : memref<2x8x16x64xf32, #tpu.memory_space<vmem>>, vector<2x1x16x64xf32>
    %164 = arith.mulf %163, %159 : vector<2x1x16x64xf32>
    %c0_102 = arith.constant 0 : index
    %165 = arith.index_cast %c6_i32 : i32 to index
    %c0_103 = arith.constant 0 : index
    %c0_104 = arith.constant 0 : index
    %166 = vector.load %arg15[%c0_102, %165, %c0_103, %c0_104] : memref<2x8x16x64xf32, #tpu.memory_space<vmem>>, vector<2x1x16x64xf32>
    %167 = arith.addf %164, %166 : vector<2x1x16x64xf32>
    %c0_105 = arith.constant 0 : index
    %168 = arith.index_cast %c6_i32 : i32 to index
    %c0_106 = arith.constant 0 : index
    %c0_107 = arith.constant 0 : index
    %169 = vector.load %arg15[%c0_105, %168, %c0_106, %c0_107] : memref<2x8x16x64xf32, #tpu.memory_space<vmem>>, vector<2x1x16x64xf32>
    tpu.vector_store %arg15[%c0_105, %168, %c0_106, %c0_107], %167 {strides = array<i32>} : memref<2x8x16x64xf32, #tpu.memory_space<vmem>>, vector<2x1x16x64xf32>,
    %c7_i32 = arith.constant 7 : i32
    %c0_108 = arith.constant 0 : index
    %170 = arith.index_cast %c7_i32 : i32 to index
    %c0_109 = arith.constant 0 : index
    %c0_110 = arith.constant 0 : index
    %171 = vector.load %arg14[%c0_108, %170, %c0_109, %c0_110] : memref<2x8x16x64xf32, #tpu.memory_space<vmem>>, vector<2x1x16x64xf32>
    %172 = arith.mulf %171, %167 : vector<2x1x16x64xf32>
    %c0_111 = arith.constant 0 : index
    %173 = arith.index_cast %c7_i32 : i32 to index
    %c0_112 = arith.constant 0 : index
    %c0_113 = arith.constant 0 : index
    %174 = vector.load %arg15[%c0_111, %173, %c0_112, %c0_113] : memref<2x8x16x64xf32, #tpu.memory_space<vmem>>, vector<2x1x16x64xf32>
    %175 = arith.addf %172, %174 : vector<2x1x16x64xf32>
    %c0_114 = arith.constant 0 : index
    %176 = arith.index_cast %c7_i32 : i32 to index
    %c0_115 = arith.constant 0 : index
    %c0_116 = arith.constant 0 : index
    %177 = vector.load %arg15[%c0_114, %176, %c0_115, %c0_116] : memref<2x8x16x64xf32, #tpu.memory_space<vmem>>, vector<2x1x16x64xf32>
    tpu.vector_store %arg15[%c0_114, %176, %c0_115, %c0_116], %175 {strides = array<i32>} : memref<2x8x16x64xf32, #tpu.memory_space<vmem>>, vector<2x1x16x64xf32>,
    %c8_i32 = arith.constant 8 : i32
    %c0_117 = arith.constant 0 : index
    %c0_118 = arith.constant 0 : index
    %c0_119 = arith.constant 0 : index
    %c0_120 = arith.constant 0 : index
    %178 = vector.load %arg15[%c0_117, %c0_118, %c0_119, %c0_120] : memref<2x8x16x64xf32, #tpu.memory_space<vmem>>, vector<2x8x16x64xf32>
    %179 = vector.shape_cast %72 : vector<16x16xf32> to vector<2x8x16xf32>
    %180 = vector.shape_cast %179 : vector<2x8x16xf32> to vector<2x8x16x1xf32>
    %181 = vector.broadcast %180 : vector<2x8x16x1xf32> to vector<2x8x16x64xf32>
    %182 = arith.mulf %181, %178 : vector<2x8x16x64xf32>
    %cst_121 = arith.constant dense<0.000000e+00> : vector<2x8x64xf32>
    %183 = vector.multi_reduction <add>, %182, %cst_121 [2] : vector<2x8x16x64xf32> to vector<2x8x64xf32>
    %184 = vector.shape_cast %183 : vector<2x8x64xf32> to vector<16x64xf32>
    %c0_122 = arith.constant 0 : index
    %c0_123 = arith.constant 0 : index
    %185 = vector.load %arg11[%c0_122, %c0_123] : memref<1x64xf32, #tpu.memory_space<vmem>>, vector<1x64xf32>
    %186 = vector.broadcast %185 : vector<1x64xf32> to vector<16x64xf32>
    %187 = arith.mulf %67, %186 : vector<16x64xf32>
    %188 = arith.addf %184, %187 : vector<16x64xf32>
    %189 = arith.negf %29 : vector<16x64xf32>
    %190 = math.exp %189 : vector<16x64xf32>
    %cst_124 = arith.constant 1.000000e+00 : f32
    %191 = vector.broadcast %cst_124 : f32 to vector<16x64xf32>
    %192 = arith.addf %191, %190 : vector<16x64xf32>
    %193 = arith.divf %191, %192 : vector<16x64xf32>
    %194 = arith.mulf %29, %193 : vector<16x64xf32>
    %195 = arith.mulf %188, %194 : vector<16x64xf32>
    %c0_125 = arith.constant 0 : index
    %c0_126 = arith.constant 0 : index
    %196 = vector.load %arg12[%c0_125, %c0_126] : memref<64x32xf32, #tpu.memory_space<vmem>>, vector<64x32xf32>
    %cst_127 = arith.constant dense<0.000000e+00> : vector<16x32xf32>
    %197 = tpu.matmul %195, %196, %cst_127 {dimension_numbers = #tpu.dot_dimension_numbers<[1], [0], [0], [1], [0, 0, 1, 1], [], []>} : vector<16x64xf32>, vector<64x32xf32>, vector<16x32xf32> -> vector<16x32xf32>
    %198 = vector.shape_cast %197 : vector<16x32xf32> to vector<2x8x32xf32>
    %199 = arith.addf %0, %198 : vector<2x8x32xf32>
    %c0_128 = arith.constant 0 : index
    %c0_129 = arith.constant 0 : index
    %c0_130 = arith.constant 0 : index
    %200 = vector.load %arg13[%c0_128, %c0_129, %c0_130] : memref<2x8x32xf32, #tpu.memory_space<vmem>>, vector<2x8x32xf32>
    tpu.vector_store %arg13[%c0_128, %c0_129, %c0_130], %199 {strides = array<i32>} : memref<2x8x32xf32, #tpu.memory_space<vmem>>, vector<2x8x32xf32>,
    return
  }
  func.func @transform_0(%arg0: i32) -> (i32, i32, i32) {
    %c0_i32 = arith.constant 0 : i32
    %c0_i32_0 = arith.constant 0 : i32
    %c0_i32_1 = arith.constant 0 : i32
    return %arg0, %c0_i32, %c0_i32_0 : i32, i32, i32
  }
  func.func @transform_1(%arg0: i32) -> (i32, i32) {
    %c0_i32 = arith.constant 0 : i32
    %c0_i32_0 = arith.constant 0 : i32
    %c0_i32_1 = arith.constant 0 : i32
    return %c0_i32, %c0_i32_0 : i32, i32
  }
  func.func @transform_2(%arg0: i32) -> (i32, i32) {
    %c0_i32 = arith.constant 0 : i32
    %c0_i32_0 = arith.constant 0 : i32
    %c0_i32_1 = arith.constant 0 : i32
    return %c0_i32, %c0_i32_0 : i32, i32
  }
  func.func @transform_3(%arg0: i32) -> (i32, i32) {
    %c0_i32 = arith.constant 0 : i32
    %c0_i32_0 = arith.constant 0 : i32
    %c0_i32_1 = arith.constant 0 : i32
    return %c0_i32, %c0_i32_0 : i32, i32
  }
  func.func @transform_4(%arg0: i32) -> (i32, i32) {
    %c0_i32 = arith.constant 0 : i32
    %c0_i32_0 = arith.constant 0 : i32
    %c0_i32_1 = arith.constant 0 : i32
    return %c0_i32, %c0_i32_0 : i32, i32
  }
  func.func @transform_5(%arg0: i32) -> (i32, i32) {
    %c0_i32 = arith.constant 0 : i32
    %c0_i32_0 = arith.constant 0 : i32
    %c0_i32_1 = arith.constant 0 : i32
    return %c0_i32, %c0_i32_0 : i32, i32
  }
  func.func @transform_6(%arg0: i32) -> (i32, i32) {
    %c0_i32 = arith.constant 0 : i32
    %c0_i32_0 = arith.constant 0 : i32
    %c0_i32_1 = arith.constant 0 : i32
    return %c0_i32, %c0_i32_0 : i32, i32
  }
  func.func @transform_7(%arg0: i32) -> (i32, i32) {
    %c0_i32 = arith.constant 0 : i32
    %c0_i32_0 = arith.constant 0 : i32
    %c0_i32_1 = arith.constant 0 : i32
    return %c0_i32, %c0_i32_0 : i32, i32
  }
  func.func @transform_8(%arg0: i32) -> (i32, i32) {
    %c0_i32 = arith.constant 0 : i32
    %c0_i32_0 = arith.constant 0 : i32
    %c0_i32_1 = arith.constant 0 : i32
    return %c0_i32, %c0_i32_0 : i32, i32
  }
  func.func @transform_9(%arg0: i32) -> (i32, i32) {
    %c0_i32 = arith.constant 0 : i32
    %c0_i32_0 = arith.constant 0 : i32
    %c0_i32_1 = arith.constant 0 : i32
    return %c0_i32, %c0_i32_0 : i32, i32
  }
  func.func @transform_10(%arg0: i32) -> (i32, i32) {
    %c0_i32 = arith.constant 0 : i32
    %c0_i32_0 = arith.constant 0 : i32
    %c0_i32_1 = arith.constant 0 : i32
    return %c0_i32, %c0_i32_0 : i32, i32
  }
  func.func @transform_11(%arg0: i32) -> (i32, i32) {
    %c0_i32 = arith.constant 0 : i32
    %c0_i32_0 = arith.constant 0 : i32
    %c0_i32_1 = arith.constant 0 : i32
    return %c0_i32, %c0_i32_0 : i32, i32
  }
  func.func @transform_12(%arg0: i32) -> (i32, i32, i32) {
    %c0_i32 = arith.constant 0 : i32
    %c0_i32_0 = arith.constant 0 : i32
    %c0_i32_1 = arith.constant 0 : i32
    return %arg0, %c0_i32, %c0_i32_0 : i32, i32, i32
  }
}

</mosaic_0001>

<bundles_post_ra>
// kernel: tpu_custom_call.1
= control target key start
LH: loop header
LB: loop body
LE: loop exit
PB: predicated region body
PF: predicated region fallthrough
CT: control target
= control target key end

     0   :  { %17 = vsyncpa [#allocation5], 0  ;;  %s3731_s0 = inlined_call_operand.hbm [shape: f32[2,8,32], index: 0, kind: input, shape index: {}]   ;;  %s3732_s1 = inlined_call_operand.hbm [shape: f32[1,32], index: 1, kind: input, shape index: {}]   ;;  %s3733_s2 = inlined_call_operand.hbm [shape: f32[1,32], index: 2, kind: input, shape index: {}]   ;;  %s3734_s3 = inlined_call_operand.hbm [shape: f32[32,128], index: 3, kind: input, shape index: {}]   ;;  %s3735_s4 = inlined_call_operand.hbm [shape: f32[4,64], index: 4, kind: input, shape index: {}]   ;;  %s3736_s5 = inlined_call_operand.hbm [shape: f32[1,64], index: 5, kind: input, shape index: {}]   ;;  %s3737_s6 = inlined_call_operand.hbm [shape: f32[64,34], index: 6, kind: input, shape index: {}]   ;;  %s3738_s7 = inlined_call_operand.hbm [shape: f32[2,64], index: 7, kind: input, shape index: {}]   ;;  %s3739_s8 = inlined_call_operand.hbm [shape: f32[1,64], index: 8, kind: input, shape index: {}]   ;;  %s3740_s9 = inlined_call_operand.hbm [shape: f32[16,64], index: 9, kind: input, shape index: {}]   ;;  %s3741_s10 = inlined_call_operand.hbm [shape: f32[1,64], index: 10, kind: input, shape index: {}]   ;;  %s3742_s11 = inlined_call_operand.hbm [shape: f32[64,32], index: 11, kind: input, shape index: {}]   ;;  %s3743_s12 = inlined_call_operand.hbm [shape: f32[2,8,32], index: 12, kind: output, shape index: {}]  }
   0x1   :  { %18 = vsyncpa [#allocation8], 0 }
   0x2   :  { %19 = vsyncpa [#allocation11], 0 }
   0x3   :  { %20 = vsyncpa [#allocation14], 0 }
   0x4   :  { %21 = vsyncpa [#allocation17], 0 }
   0x5   :  { %22 = vsyncpa [#allocation20], 0 }
   0x6   :  { %23 = vsyncpa [#allocation23], 0 }
   0x7   :  { %24 = vsyncpa [#allocation6], 0  ;;  %s2729_s21 = smov [#allocation7]   ;;  %s2427_s25 = scalar_lea.hbm %s3732_s1, 16 }
   0x8   :  { %s43_s22 = sshll.u32 %s2729_s21, 4  ;;  %p2428_p0 = scmp.ne.s32.totalorder %s3732_s1, %s2427_s25  ;;  %s44_s22 = int_to_ptr.vmem [resolvable:$true] %s43_s22 }
   0x9   :  { %p2431_p1 = scmp.lt.u32.totalorder %s2427_s25, %s3732_s1 }
   0xb   :  { %p2433_p2 = pnand %p2431_p1, %p2428_p0 }
   0xd   :  { %2436 = shalt.err (!%p2433_p2)
}
   0xe   :  { %s2437_s30 = scalar_lea.vmem %s44_s22, 16  ;;  %s2441_s13 = scalar_lea.vmem %s44_s22, 32 }
   0xf   :  { %p2438_p3 = scmp.ne.s32.totalorder %s44_s22, %s2437_s30  ;;  %p2442_p4 = scmp.lt.s32.totalorder %s44_s22, %s44_s22 }
  0x10   :  { %p2443_p5 = scmp.lt.s32.totalorder %s2441_s13, %s2437_s30 }
  0x12   :  { %p2444_p6 = por %p2443_p5, %p2442_p4 }
  0x14   :  { %p2445_p7 = pnand %p2444_p6, %p2438_p3 }
  0x16   :  { %2448 = shalt.err (!%p2445_p7)
}
  0x17   :  { %46 = dma.hbm_to_vmem [thread:$0]  %s3732_s1, 16, %s44_s22, [#allocation8]  }
  0x18   :  { %s2730_s16 = smov [#allocation10]   ;;  %s2731_s18 = smov [#allocation13]  }
  0x19   :  { %s62_s17 = sshll.u32 %s2730_s16, 4  ;;  %s85_s19 = sshll.u32 %s2731_s18, 4  ;;  %s63_s17 = int_to_ptr.vmem [resolvable:$true] %s62_s17  ;;  %s86_s19 = int_to_ptr.vmem [resolvable:$true] %s85_s19 }
  0x1a   :  { %s2449_s23 = scalar_lea.hbm %s3734_s3, 512 }
  0x1b   :  { %p2450_p8 = scmp.ne.s32.totalorder %s3734_s3, %s2449_s23  ;;  %p2453_p9 = scmp.lt.u32.totalorder %s2449_s23, %s3734_s3 }
  0x1d   :  { %p2455_p10 = pnand %p2453_p9, %p2450_p8 }
  0x1f   :  { %2458 = shalt.err (!%p2455_p10)
}
  0x20   :  { %s2459_s1 = scalar_lea.vmem %s63_s17, 512  ;;  %p2464_p12 = scmp.lt.s32.totalorder %s63_s17, %s63_s17 }
  0x21   :  { %p2460_p11 = scmp.ne.s32.totalorder %s63_s17, %s2459_s1  ;;  %p2465_p13 = scmp.lt.s32.totalorder %s2459_s1, %s2459_s1 }
  0x23   :  { %p2466_p0 = por %p2465_p13, %p2464_p12 }
  0x25   :  { %p2467_p1 = pnand %p2466_p0, %p2460_p11 }
  0x27   :  { %2470 = shalt.err (!%p2467_p1)
}
  0x28   :  { %s2732_s22 = smov 128   ;;  %s2733_s28 = smov 8  }
  0x29   :  { %68 = dma.hbm_to_vmem [thread:$0]  %s3734_s3, 512, %s63_s17, [#allocation11], %s2732_s22, %s2732_s22, %s2733_s28  }
  0x2a   :  { %s2471_s15 = scalar_lea.hbm %s3736_s5, 16 }
  0x2b   :  { %p2472_p2 = scmp.ne.s32.totalorder %s3736_s5, %s2471_s15  ;;  %p2475_p3 = scmp.lt.u32.totalorder %s2471_s15, %s3736_s5 }
  0x2d   :  { %p2477_p4 = pnand %p2475_p3, %p2472_p2 }
  0x2f   :  { %2480 = shalt.err (!%p2477_p4)
}
  0x30   :  { %s2481_s23 = scalar_lea.vmem %s86_s19, 16  ;;  %s2485_s24 = scalar_lea.vmem %s86_s19, 32 }
  0x31   :  { %p2482_p5 = scmp.ne.s32.totalorder %s86_s19, %s2481_s23  ;;  %p2486_p6 = scmp.lt.s32.totalorder %s86_s19, %s86_s19 }
  0x32   :  { %p2487_p7 = scmp.lt.s32.totalorder %s2485_s24, %s2481_s23 }
  0x34   :  { %p2488_p8 = por %p2487_p7, %p2486_p6 }
  0x36   :  { %p2489_p9 = pnand %p2488_p8, %p2482_p5 }
  0x38   :  { %2492 = shalt.err (!%p2489_p9)
}
  0x39   :  { %88 = dma.hbm_to_vmem [thread:$0]  %s3736_s5, 16, %s86_s19, [#allocation14]  }
  0x3a   :  { %s2734_s25 = smov [#allocation16]   ;;  %s2735_s27 = smov [#allocation19]  }
  0x3b   :  { %s107_s26 = sshll.u32 %s2734_s25, 4  ;;  %s126_s1 = sshll.u32 %s2735_s27, 4  ;;  %s108_s26 = int_to_ptr.vmem [resolvable:$true] %s107_s26  ;;  %s127_s1 = int_to_ptr.vmem [resolvable:$true] %s126_s1 }
  0x3c   :  { %s2493_s13 = scalar_lea.hbm %s3738_s7, 32 }
  0x3d   :  { %p2494_p10 = scmp.ne.s32.totalorder %s3738_s7, %s2493_s13  ;;  %p2497_p11 = scmp.lt.u32.totalorder %s2493_s13, %s3738_s7 }
  0x3f   :  { %p2499_p12 = pnand %p2497_p11, %p2494_p10 }
  0x41   :  { %2502 = shalt.err (!%p2499_p12)
}
  0x42   :  { %s2503_s5 = scalar_lea.vmem %s108_s26, 32  ;;  %p2508_p0 = scmp.lt.s32.totalorder %s108_s26, %s108_s26 }
  0x43   :  { %p2504_p13 = scmp.ne.s32.totalorder %s108_s26, %s2503_s5  ;;  %p2509_p1 = scmp.lt.s32.totalorder %s2503_s5, %s2503_s5 }
  0x45   :  { %p2510_p2 = por %p2509_p1, %p2508_p0 }
  0x47   :  { %p2511_p3 = pnand %p2510_p2, %p2504_p13 }
  0x49   :  { %2514 = shalt.err (!%p2511_p3)
}
  0x4a   :  { %110 = dma.hbm_to_vmem [thread:$0]  %s3738_s7, 32, %s108_s26, [#allocation17]  }
  0x4b   :  { %s2515_s24 = scalar_lea.hbm %s3740_s9, 256 }
  0x4c   :  { %p2516_p4 = scmp.ne.s32.totalorder %s3740_s9, %s2515_s24  ;;  %p2519_p5 = scmp.lt.u32.totalorder %s2515_s24, %s3740_s9 }
  0x4e   :  { %p2521_p6 = pnand %p2519_p5, %p2516_p4 }
  0x50   :  { %2524 = shalt.err (!%p2521_p6)
}
  0x51   :  { %s2525_s29 = scalar_lea.vmem %s127_s1, 256  ;;  %p2530_p8 = scmp.lt.s32.totalorder %s127_s1, %s127_s1 }
  0x52   :  { %p2526_p7 = scmp.ne.s32.totalorder %s127_s1, %s2525_s29  ;;  %p2531_p9 = scmp.lt.s32.totalorder %s2525_s29, %s2525_s29 }
  0x54   :  { %p2532_p10 = por %p2531_p9, %p2530_p8 }
  0x56   :  { %p2533_p11 = pnand %p2532_p10, %p2526_p7 }
  0x58   :  { %2536 = shalt.err (!%p2533_p11)
}
  0x59   :  { %132 = dma.hbm_to_vmem [thread:$0]  %s3740_s9, 256, %s127_s1, [#allocation20], %s2732_s22, %s2732_s22, %s2733_s28  }
  0x5a   :  { %s2736_s30 = smov [#allocation4]   ;;  %s2737_s14 = smov [#allocation9]  }
  0x5b   :  { %s30_s13 = sshll.u32 %s2736_s30, 4  ;;  %s53_s15 = sshll.u32 %s2737_s14, 4  ;;  %s31_s13 = int_to_ptr.vmem [resolvable:$true] %s30_s13  ;;  %s54_s15 = int_to_ptr.vmem [resolvable:$true] %s53_s15 }
  0x5c   :  { %s2537_s5 = scalar_lea.hbm %s3731_s0, 256 }
  0x5d   :  { %p2538_p12 = scmp.ne.s32.totalorder %s3731_s0, %s2537_s5  ;;  %p2541_p13 = scmp.lt.u32.totalorder %s2537_s5, %s3731_s0 }
  0x5f   :  { %p2543_p0 = pnand %p2541_p13, %p2538_p12 }
  0x61   :  { %2546 = shalt.err (!%p2543_p0)
}
  0x62   :  { %s2547_s9 = scalar_lea.vmem %s31_s13, 256  ;;  %p2552_p2 = scmp.lt.s32.totalorder %s31_s13, %s31_s13 }
  0x63   :  { %p2548_p1 = scmp.ne.s32.totalorder %s31_s13, %s2547_s9  ;;  %p2553_p3 = scmp.lt.s32.totalorder %s2547_s9, %s2547_s9 }
  0x65   :  { %p2554_p4 = por %p2553_p3, %p2552_p2 }
  0x67   :  { %p2555_p5 = pnand %p2554_p4, %p2548_p1 }
  0x69   :  { %2558 = shalt.err (!%p2555_p5)
}
  0x6a   :  { %36 = dma.hbm_to_vmem [thread:$0]  %s3731_s0, 256, %s31_s13, [#allocation5], %s2732_s22, %s2732_s22, %s2733_s28  }
  0x6b   :  { %s2559_s25 = scalar_lea.hbm %s3733_s2, 16 }
  0x6c   :  { %p2560_p6 = scmp.ne.s32.totalorder %s3733_s2, %s2559_s25  ;;  %p2563_p7 = scmp.lt.u32.totalorder %s2559_s25, %s3733_s2 }
  0x6e   :  { %p2565_p8 = pnand %p2563_p7, %p2560_p6 }
  0x70   :  { %2568 = shalt.err (!%p2565_p8)
}
  0x71   :  { %s2569_s30 = scalar_lea.vmem %s54_s15, 16  ;;  %s2573_s14 = scalar_lea.vmem %s54_s15, 32 }
  0x72   :  { %p2570_p9 = scmp.ne.s32.totalorder %s54_s15, %s2569_s30  ;;  %p2574_p10 = scmp.lt.s32.totalorder %s54_s15, %s54_s15 }
  0x73   :  { %p2575_p11 = scmp.lt.s32.totalorder %s2573_s14, %s2569_s30 }
  0x75   :  { %p2576_p12 = por %p2575_p11, %p2574_p10 }
  0x77   :  { %p2577_p13 = pnand %p2576_p12, %p2570_p9 }
  0x79   :  { %2580 = shalt.err (!%p2577_p13)
}
  0x7a   :  { %56 = dma.hbm_to_vmem [thread:$0]  %s3733_s2, 16, %s54_s15, [#allocation8]  }
  0x7b   :  { %s2738_s16 = smov [#allocation12]   ;;  %s2739_s5 = smov [#allocation15]  }
  0x7c   :  { %s75_s18 = sshll.u32 %s2738_s16, 4  ;;  %s94_s19 = sshll.u32 %s2739_s5, 4  ;;  %s76_s18 = int_to_ptr.vmem [resolvable:$true] %s75_s18  ;;  %s95_s19 = int_to_ptr.vmem [resolvable:$true] %s94_s19 }
  0x7d   :  { %s2581_s23 = scalar_lea.hbm %s3735_s4, 64 }
  0x7e   :  { %p2582_p0 = scmp.ne.s32.totalorder %s3735_s4, %s2581_s23  ;;  %p2585_p1 = scmp.lt.u32.totalorder %s2581_s23, %s3735_s4 }
  0x80   :  { %p2587_p2 = pnand %p2585_p1, %p2582_p0 }
  0x82   :  { %2590 = shalt.err (!%p2587_p2)
}
  0x83   :  { %s2591_s2 = scalar_lea.vmem %s76_s18, 64  ;;  %p2596_p4 = scmp.lt.s32.totalorder %s76_s18, %s76_s18 }
  0x84   :  { %p2592_p3 = scmp.ne.s32.totalorder %s76_s18, %s2591_s2  ;;  %p2597_p5 = scmp.lt.s32.totalorder %s2591_s2, %s2591_s2 }
  0x86   :  { %p2598_p6 = por %p2597_p5, %p2596_p4 }
  0x88   :  { %p2599_p7 = pnand %p2598_p6, %p2592_p3 }
  0x8a   :  { %2602 = shalt.err (!%p2599_p7)
}
  0x8b   :  { %78 = dma.hbm_to_vmem [thread:$0]  %s3735_s4, 64, %s76_s18, [#allocation11]  }
  0x8c   :  { %s2603_s29 = scalar_lea.hbm %s3737_s6, 1024 }
  0x8d   :  { %p2604_p8 = scmp.ne.s32.totalorder %s3737_s6, %s2603_s29  ;;  %p2607_p9 = scmp.lt.u32.totalorder %s2603_s29, %s3737_s6 }
  0x8f   :  { %p2609_p10 = pnand %p2607_p9, %p2604_p8 }
  0x91   :  { %2612 = shalt.err (!%p2609_p10)
}
  0x92   :  { %s2613_s0 = scalar_lea.vmem %s95_s19, 1024  ;;  %p2618_p12 = scmp.lt.s32.totalorder %s95_s19, %s95_s19 }
  0x93   :  { %p2614_p11 = scmp.ne.s32.totalorder %s95_s19, %s2613_s0  ;;  %p2619_p13 = scmp.lt.s32.totalorder %s2613_s0, %s2613_s0 }
  0x95   :  { %p2620_p0 = por %p2619_p13, %p2618_p12 }
  0x97   :  { %p2621_p1 = pnand %p2620_p0, %p2614_p11 }
  0x99   :  { %2624 = shalt.err (!%p2621_p1)
}
  0x9a   :  { %100 = dma.hbm_to_vmem [thread:$0]  %s3737_s6, 1024, %s95_s19, [#allocation14], %s2732_s22, %s2732_s22, %s2733_s28  }
  0x9b   :  { %s2740_s16 = smov [#allocation18]   ;;  %s2741_s5 = smov [#allocation21]  }
  0x9c   :  { %s117_s18 = sshll.u32 %s2740_s16, 4  ;;  %s139_s20 = sshll.u32 %s2741_s5, 4  ;;  %s118_s18 = int_to_ptr.vmem [resolvable:$true] %s117_s18  ;;  %s140_s20 = int_to_ptr.vmem [resolvable:$true] %s139_s20 }
  0x9d   :  { %s2625_s9 = scalar_lea.hbm %s3739_s8, 16 }
  0x9e   :  { %p2626_p2 = scmp.ne.s32.totalorder %s3739_s8, %s2625_s9  ;;  %p2629_p3 = scmp.lt.u32.totalorder %s2625_s9, %s3739_s8 }
  0xa0   :  { %p2631_p4 = pnand %p2629_p3, %p2626_p2 }
  0xa2   :  { %2634 = shalt.err (!%p2631_p4)
}
  0xa3   :  { %s2635_s6 = scalar_lea.vmem %s118_s18, 16  ;;  %s2639_s19 = scalar_lea.vmem %s118_s18, 32 }
  0xa4   :  { %p2636_p5 = scmp.ne.s32.totalorder %s118_s18, %s2635_s6  ;;  %p2640_p6 = scmp.lt.s32.totalorder %s118_s18, %s118_s18 }
  0xa5   :  { %p2641_p7 = scmp.lt.s32.totalorder %s2639_s19, %s2635_s6 }
  0xa7   :  { %p2642_p8 = por %p2641_p7, %p2640_p6 }
  0xa9   :  { %p2643_p9 = pnand %p2642_p8, %p2636_p5 }
  0xab   :  { %2646 = shalt.err (!%p2643_p9)
}
  0xac   :  { %120 = dma.hbm_to_vmem [thread:$0]  %s3739_s8, 16, %s118_s18, [#allocation17]  }
  0xad   :  { %s2647_s29 = scalar_lea.hbm %s3741_s10, 16 }
  0xae   :  { %p2648_p10 = scmp.ne.s32.totalorder %s3741_s10, %s2647_s29  ;;  %p2651_p11 = scmp.lt.u32.totalorder %s2647_s29, %s3741_s10 }
  0xb0   :  { %p2653_p12 = pnand %p2651_p11, %p2648_p10 }
  0xb2   :  { %2656 = shalt.err (!%p2653_p12)
}
  0xb3   :  { %s2657_s0 = scalar_lea.vmem %s140_s20, 16  ;;  %s2661_s4 = scalar_lea.vmem %s140_s20, 32 }
  0xb4   :  { %p2658_p13 = scmp.ne.s32.totalorder %s140_s20, %s2657_s0  ;;  %p2662_p0 = scmp.lt.s32.totalorder %s140_s20, %s140_s20 }
  0xb5   :  { %p2663_p1 = scmp.lt.s32.totalorder %s2661_s4, %s2657_s0 }
  0xb7   :  { %p2664_p2 = por %p2663_p1, %p2662_p0 }
  0xb9   :  { %p2665_p3 = pnand %p2664_p2, %p2658_p13 }
  0xbb   :  { %2668 = shalt.err (!%p2665_p3)
}
  0xbc   :  { %142 = dma.hbm_to_vmem [thread:$0]  %s3741_s10, 16, %s140_s20, [#allocation20]  }
  0xbd   :  { %s2742_s16 = smov [#allocation22]   ;;  %s2669_s23 = scalar_lea.hbm %s3742_s11, 1024 }
  0xbe   :  { %s148_s18 = sshll.u32 %s2742_s16, 4  ;;  %p2670_p4 = scmp.ne.s32.totalorder %s3742_s11, %s2669_s23  ;;  %s149_s18 = int_to_ptr.vmem [resolvable:$true] %s148_s18 }
  0xbf   :  { %p2673_p5 = scmp.lt.u32.totalorder %s2669_s23, %s3742_s11 }
  0xc1   :  { %p2675_p6 = pnand %p2673_p5, %p2670_p4 }
  0xc3   :  { %2678 = shalt.err (!%p2675_p6)
}
  0xc4   :  { %s2679_s2 = scalar_lea.vmem %s149_s18, 1024  ;;  %p2684_p8 = scmp.lt.s32.totalorder %s149_s18, %s149_s18 }
  0xc5   :  { %p2680_p7 = scmp.ne.s32.totalorder %s149_s18, %s2679_s2  ;;  %p2685_p9 = scmp.lt.s32.totalorder %s2679_s2, %s2679_s2 }
  0xc7   :  { %p2686_p10 = por %p2685_p9, %p2684_p8 }
  0xc9   :  { %p2687_p11 = pnand %p2686_p10, %p2680_p7 }
  0xcb   :  { %2690 = shalt.err (!%p2687_p11)
}
  0xcc   :  { %154 = dma.hbm_to_vmem [thread:$0]  %s3742_s11, 1024, %s149_s18, [#allocation23], %s2732_s22, %s2732_s22, %s2733_s28  }
  0xcd   :  { %2713 = dma.done.wait [#allocation5], 256  }
  0xce   :  { %2714 = vsyncadd [#allocation5], 4294967040 }
  0xcf   :  { %2715 = dma.done.wait [#allocation8], 32  }
  0xd0   :  { %2716 = vsyncadd [#allocation8], 4294967264 }
  0xd1   :  { %2717 = dma.done.wait [#allocation11], 576  }
  0xd2   :  { %2718 = vsyncadd [#allocation11], 4294966720 }
  0xd3   :  { %2719 = dma.done.wait [#allocation14], 1040  }
  0xd4   :  { %2720 = vsyncadd [#allocation14], 4294966256 }
  0xd5   :  { %2721 = dma.done.wait [#allocation17], 48  }
  0xd6   :  { %2722 = vsyncadd [#allocation17], 4294967248 }
  0xd7   :  { %2723 = dma.done.wait [#allocation20], 272  }
  0xd8   :  { %2724 = vsyncadd [#allocation20], 4294967024 }
  0xd9   :  { %2725 = dma.done.wait [#allocation23], 1024  }
  0xda   :  { %2726 = vsyncadd [#allocation23], 4294966272  ;;  %vm193_vm0 = vcmask 261120   ;;  %v191_v0 = vld [vmem:[#allocation4] sm:$0xff]  ;;  %v192_v1 = vld [vmem:[#allocation4 + $0x8] sm:$0xff]  ;;  %vm330_vm1 = vcmask 1042432  }
  0xdb   :  { %v194_v2 = vsel %vm193_vm0, %v191_v0, 0.0  ;;  %v197_v3 = vsel %vm193_vm0, %v192_v1, 0.0  ;;  %v239_v14 = vld [vmem:[#allocation10] sm:$0xff]  ;;  %v240_v15 = vld [vmem:[#allocation10 + $0x8] sm:$0xff]  ;;  %v241_v16 = vld [vmem:[#allocation10 + $0x10] sm:$0xff]  ;;  %vm355_vm2 = vcmask 1046528  }
  0xdc   :  { %195 = vadd.xlane.f32.xlu0 %v194_v2  ;;  %v2270_v17 = vpack.c.bf16 %v240_v15, %v239_v14  ;;  %v242_v18 = vld [vmem:[#allocation10 + $0x18] sm:$0xff]  ;;  %v437_v36 = vld [vmem:[#allocation15] sm:$0xff]  ;;  %v438_v37 = vld [vmem:[#allocation15 + $0x8] sm:$0xff]  ;;  %vm379_vm3 = vcmask 1045504   ;;  %vm403_vm4 = vcmask 1044480   ;;  %s2744_s11 = smov 64  }
  0xdd   :  { %v2274_v19 = vpack.c.bf16 %v242_v18, %v241_v16  ;;  %v2174_v27 = vld [vmem:[#allocation7] ss:$0 sm:$0xff]  ;;  %v2175_v29 = vld [vmem:[#allocation9] ss:$0 sm:$0xff]  ;;  %v2278_v38 = vpack.c.bf16 %v438_v37, %v437_v36  ;;  %v441_v42 = vld [vmem:[#allocation15 + $0x20] sm:$0xff]  ;;  %vm445_vm5 = vcmask 523264  }
  0xde   :  { %2271 = vmatprep.subr.bf16.mxu0 %v2270_v17  ;;  %v439_v39 = vld [vmem:[#allocation15 + $0x10] sm:$0xff]  ;;  %v440_v40 = vld [vmem:[#allocation15 + $0x18] sm:$0xff]  ;;  %v442_v43 = vld [vmem:[#allocation15 + $0x28] sm:$0xff]  ;;  %vm2034_vm8 = vcmask 1041409   ;;  %vm2037_vm9 = vcmask 1042434   ;;  %vm2040_vm10 = vcmask 1043459  }
  0xdf   :  { %2273 = vmatpush3.bf16.msra.mxu0 %v2270_v17  ;;  %2279 = vmatprep.subr.bf16.mxu1 %v2278_v38  ;;  %v2282_v41 = vpack.c.bf16 %v440_v40, %v439_v39  ;;  %v2286_v44 = vpack.c.bf16 %v442_v43, %v441_v42  ;;  %v443_v45 = vld [vmem:[#allocation15 + $0x30] sm:$0xff]  ;;  %v444_v46 = vld [vmem:[#allocation15 + $0x38] sm:$0xff]  ;;  %vm2043_vm11 = vcmask 1044484   ;;  %vm2046_vm12 = vcmask 1045509   ;;  %s2747_s6 = smov [#allocation24]  }
  0xe0   :  { %198 = vadd.xlane.f32.xlu0 %v197_v3  ;;  %2275 = vmatprep.subr.bf16.mxu0 %v2274_v19  ;;  %v2290_v47 = vpack.c.bf16 %v444_v46, %v443_v45  ;;  %v2179_v49 = vld [vmem:[#allocation12 + $0x1] ss:$0 sm:$0xff]  ;;  %v2180_v50 = vld [vmem:[#allocation12 + $0x2] ss:$0 sm:$0xff]  ;;  %v2181_v52 = vld [vmem:[#allocation12 + $0x3] ss:$0 sm:$0xff] }
  0xe1   :  { %2281 = vmatpush3.bf16.msra.mxu1 %v2278_v38  ;;  %v2178_v3 = vld [vmem:[#allocation12] ss:$0 sm:$0xff]  ;;  %v2743_v45 = vmov 0   ;;  %vm2049_vm13 = vcmask 1046534   ;;  %vm2052_vm14 = vcmask 1047559   ;;  %s2156_s19 = sshll.u32 %s2747_s6, 4  ;;  %s2157_s19 = int_to_ptr.vmem [resolvable:$true] %s2156_s19 }
  0xe2   :  { %2283 = vmatprep.subr.bf16.mxu1 %v2282_v41  ;;  %2329 = vset.pattern.permute.xlu1 %v2743_v45  ;;  %s2691_s15 = scalar_lea.vmem %s2157_s19, 256  ;;  %p2696_p13 = scmp.lt.s32.totalorder %s2157_s19, %s2157_s19 }
  0xe3   :  { %2277 = vmatpush3.bf16.msra.mxu0 %v2274_v19  ;;  %2331 = vset.pattern.permute.xlu0 %v2743_v45  ;;  %p2692_p12 = scmp.ne.s32.totalorder %s2157_s19, %s2691_s15  ;;  %p2697_p0 = scmp.lt.s32.totalorder %s2691_s15, %s2691_s15 }
  0xe5   :  { %2285 = vmatpush3.bf16.msra.mxu1 %v2282_v41  ;;  %p2698_p1 = por %p2697_p0, %p2696_p13 }
  0xe6   :  { %2287 = vmatprep.subr.bf16.mxu1 %v2286_v44 }
  0xe7   :  { %p2699_p2 = pnand %p2698_p1, %p2692_p12 }
  0xe9   :  { %2289 = vmatpush3.bf16.msra.mxu1 %v2286_v44 }
  0xea   :  { %2291 = vmatprep.subr.bf16.mxu1 %v2290_v47 }
  0xed   :  { %2293 = vmatpush3.bf16.msra.mxu1 %v2290_v47 }
 0x169   :  { %v196_v4 = vpop.xlane.xlu0 %195 }
 0x16a   :  { %v201_v5 = vmul.f32 0.03125, %v196_v4 }
 0x16c   :  { %v203_v6 = vsub.f32 %v191_v0, %v201_v5 }
 0x16d   :  { %v199_v7 = vpop.xlane.xlu0 %198 }
 0x16e   :  { %v202_v8 = vmul.f32 0.03125, %v199_v7  ;;  %v205_v9 = vmul.f32 %v203_v6, %v203_v6 }
 0x170   :  { %v204_v10 = vsub.f32 %v192_v1, %v202_v8  ;;  %v207_v11 = vsel %vm193_vm0, %v205_v9, 0.0 }
 0x171   :  { %208 = vadd.xlane.f32.xlu1 %v207_v11 }
 0x172   :  { %v206_v12 = vmul.f32 %v204_v10, %v204_v10 }
 0x174   :  { %v210_v13 = vsel %vm193_vm0, %v206_v12, 0.0 }
 0x175   :  { %211 = vadd.xlane.f32.xlu1 %v210_v13 }
 0x1fe   :  { %v209_v20 = vpop.xlane.xlu1 %208 }
 0x1ff   :  { %v213_v21 = vmul.f32 0.03125, %v209_v20 }
 0x201   :  { %v215_v22 = vadd.f32 1e-05, %v213_v21 }
 0x202   :  { %v212_v23 = vpop.xlane.xlu1 %211 }
 0x203   :  { %2333 = vrsqrt.f32 %v215_v22  ;;  %v214_v24 = vmul.f32 0.03125, %v212_v23 }
 0x205   :  { %v216_v25 = vadd.f32 1e-05, %v214_v24 }
 0x207   :  { %2335 = vrsqrt.f32 %v216_v25 }
 0x20d   :  { %v2334_v26 = vpop.eup %2333 }
 0x20e   :  { %v219_v28 = vmul.f32 %v2334_v26, %v203_v6 }
 0x210   :  { %v228_v30 = vmul.f32 %v2174_v27, %v219_v28 }
 0x211   :  { %v2336_v31 = vpop.eup %2335 }
 0x212   :  { %v220_v32 = vmul.f32 %v2336_v31, %v204_v10  ;;  %v237_v33 = vadd.f32 %v2175_v29, %v228_v30  ;;  %v2182_v31 = vld [vmem:[#allocation13] ss:$0 sm:$0xff] }
 0x214   :  { %v229_v34 = vmul.f32 %v2174_v27, %v220_v32  ;;  %2229 = vmatprep.mubr.msk.f32.mxu0 %vm193_vm0, %v237_v33 }
 0x216   :  { %v238_v35 = vadd.f32 %v2175_v29, %v229_v34 }
 0x218   :  { %2230 = vmatmul.mubr.msk.f32.vlgmr.msra.gmra.mrb[0].mxu0 %vm193_vm0, %v238_v35 }
 0x2eb   :  { %v2978_v48 = vpop.f32.mrb[0].mxu0 }
 0x2ec   :  { %v327_v51 = vrot.slane %v2978_v48, 5  ;;  %v2192_v53 = vmul.f32 -1.442695, %v2978_v48  ;;  %v2982_v54 = vpop.f32.mrb[1].mxu0 }
 0x2ed   :  { %v326_v55 = vrot.slane %v2982_v54, 5  ;;  %v2191_v59 = vmul.f32 -1.442695, %v2982_v54 }
 0x2ee   :  { %v332_v56 = vsel %vm330_vm1, 0.0, %v327_v51  ;;  %v350_v57 = vmul.f32 %v2179_v49, %v327_v51  ;;  %v374_v58 = vmul.f32 %v2180_v50, %v327_v51  ;;  %v398_v62 = vmul.f32 %v2181_v52, %v327_v51 }
 0x2ef   :  { %v349_v60 = vmul.f32 %v2179_v49, %v332_v56  ;;  %v373_v61 = vmul.f32 %v2180_v50, %v332_v56  ;;  %2337 = vpow2.f32 %v2192_v53  ;;  %v397_v1 = vmul.f32 %v2181_v52, %v332_v56 }
 0x2f0   :  { %v360_v63 = vrot.slane %v350_v57, 1  ;;  %v384_v0 = vrot.slane %v374_v58, 2  ;;  %v331_v2 = vsel %vm330_vm1, 0.0, %v326_v55  ;;  %v348_v7 = vmul.f32 %v2179_v49, %v326_v55 }
 0x2f1   :  { %v359_v4 = vrot.slane %v349_v60, 1  ;;  %v383_v5 = vrot.slane %v373_v61, 2  ;;  %v347_v6 = vmul.f32 %v2179_v49, %v331_v2  ;;  %v371_v8 = vmul.f32 %v2180_v50, %v331_v2 }
 0x2f2   :  { %v372_v9 = vmul.f32 %v2180_v50, %v326_v55  ;;  %v396_v10 = vmul.f32 %v2181_v52, %v326_v55  ;;  %2339 = vpow2.f32 %v2191_v59  ;;  %v408_v11 = vrot.slane %v398_v62, 3 }
 0x2f3   :  { %v356_v12 = vrot.slane %v347_v6, 1  ;;  %v357_v13 = vrot.slane %v348_v7, 1  ;;  %v339_v14 = vmul.f32 %v2178_v3, %v332_v56  ;;  %v338_v16 = vmul.f32 %v2178_v3, %v331_v2 }
 0x2f4   :  { %v381_v15 = vrot.slane %v372_v9, 2  ;;  %v361_v17 = vsel %vm355_vm2, %v359_v4, %v360_v63  ;;  %v380_v18 = vrot.slane %v371_v8, 2  ;;  %v405_v19 = vrot.slane %v396_v10, 3 }
 0x2f5   :  { %v358_v20 = vsel %vm355_vm2, %v356_v12, %v357_v13  ;;  %v365_v21 = vadd.f32 %v361_v17, %v339_v14  ;;  %v395_v22 = vmul.f32 %v2181_v52, %v331_v2  ;;  %v385_v24 = vsel %vm379_vm3, %v383_v5, %v384_v0 }
 0x2f6   :  { %v364_v23 = vadd.f32 %v358_v20, %v338_v16  ;;  %v407_v25 = vrot.slane %v397_v1, 3  ;;  %v382_v26 = vsel %vm379_vm3, %v380_v18, %v381_v15  ;;  %v610_v61 = vlaneseq }
 0x2f7   :  { %v389_v27 = vadd.f32 %v385_v24, %v365_v21  ;;  %v404_v28 = vrot.slane %v395_v22, 3  ;;  %v2745_v4 = vmov 1  }
 0x2f8   :  { %v388_v29 = vadd.f32 %v382_v26, %v364_v23  ;;  %v409_v30 = vsel %vm403_vm4, %v407_v25, %v408_v11  ;;  %v3020_v62 = vshrl.u32 %v610_v61, 7 }
 0x2f9   :  { %v2338_v32 = vpop.eup %2337  ;;  %v406_v33 = vsel %vm403_vm4, %v404_v28, %v405_v19  ;;  %v413_v34 = vadd.f32 %v409_v30, %v389_v27 }
 0x2fa   :  { %v1922_v35 = vadd.f32 1.0, %v2338_v32  ;;  %v412_v36 = vadd.f32 %v406_v33, %v388_v29  ;;  %v926_v0 = vsub.s32 1, %v3020_v62  ;;  %v938_v3 = vsub.s32 2, %v3020_v62  ;;  %v2187_v32 = vld [vmem:[#allocation16] ss:$0 sm:$0xff] }
 0x2fb   :  { %v422_v37 = vadd.f32 %v2182_v31, %v413_v34  ;;  %v3028_v5 = vsub.s32 0, %v3020_v62  ;;  %v950_v7 = vsub.s32 3, %v3020_v62  ;;  %v962_v10 = vsub.s32 4, %v3020_v62 }
 0x2fc   :  { %v2340_v38 = vpop.eup %2339  ;;  %2341 = vrcp.f32 %v1922_v35  ;;  %v421_v39 = vadd.f32 %v2182_v31, %v412_v36  ;;  %v974_v12 = vsub.s32 5, %v3020_v62  ;;  %v986_v14 = vsub.s32 6, %v3020_v62 }
 0x2fd   :  { %v1921_v40 = vadd.f32 1.0, %v2340_v38  ;;  %v2184_v41 = vmul.f32 -1.442695, %v422_v37  ;;  %v998_v16 = vsub.s32 7, %v3020_v62  ;;  %v2189_v38 = vld [vmem:[#allocation16 + $0x1] ss:$0 sm:$0xff] }
 0x2fe   :  { %v2183_v42 = vmul.f32 -1.442695, %v421_v39 }
 0x2ff   :  { %2343 = vrcp.f32 %v1921_v40 }
 0x300   :  { %2345 = vpow2.f32 %v2183_v42 }
 0x301   :  { %2347 = vpow2.f32 %v2184_v41 }
 0x306   :  { %v2342_v43 = vpop.eup %2341 }
 0x307   :  { %v2995_v44 = vmul.f32 %v2342_v43, %v2978_v48 }
 0x309   :  { %v2344_v46 = vpop.eup %2343  ;;  %v1938_v47 = vrot.slane %v2995_v44, 1  ;;  %v1939_v55 = vrot.slane %v2995_v44, 2 }
 0x30a   :  { %v2346_v49 = vpop.eup %2345  ;;  %v2999_v50 = vmul.f32 %v2344_v46, %v2982_v54 }
 0x30b   :  { %v2348_v51 = vpop.eup %2347  ;;  %1963 = vrot.lane.b32.xlu1 %v1938_v47, %s2744_s11  ;;  %v429_v52 = vadd.f32 1.0, %v2346_v49 }
 0x30c   :  { %1945 = vrot.lane.b32.xlu0 %v2999_v50, %s2744_s11  ;;  %v430_v48 = vadd.f32 1.0, %v2348_v51  ;;  %v1931_v53 = vrot.slane %v2999_v50, 1  ;;  %v1933_v54 = vrot.slane %v2999_v50, 3  ;;  %v1932_v56 = vrot.slane %v2999_v50, 2 }
 0x30d   :  { %2349 = vrcp.f32 %v429_v52  ;;  %v1935_v34 = vrot.slane %v2999_v50, 5  ;;  %v1937_v47 = vrot.slane %v2999_v50, 7 }
 0x30e   :  { %2351 = vrcp.f32 %v430_v48 }
 0x30f   :  { %1947 = vrot.lane.b32.xlu1 %v1931_v53, %s2744_s11 }
 0x310   :  { %1965 = vrot.lane.b32.xlu0 %v1939_v55, %s2744_s11 }
 0x313   :  { %1951 = vrot.lane.b32.xlu1 %v1933_v54, %s2744_s11 }
 0x314   :  { %1949 = vrot.lane.b32.xlu0 %v1932_v56, %s2744_s11  ;;  %v1944_v56 = vrot.slane %v2995_v44, 7 }
 0x317   :  { %v2350_v57 = vpop.eup %2349 }
 0x318   :  { %v2352_v58 = vpop.eup %2351  ;;  %v3012_v59 = vmul.f32 %v2350_v57, %v421_v39  ;;  %v1936_v39 = vrot.slane %v2999_v50, 6 }
 0x319   :  { %v3014_v60 = vmul.f32 %v2352_v58, %v422_v37  ;;  %v2188_v37 = vld [vmem:[#allocation18] ss:$0 sm:$0xff] }
 0x31a   :  { %2248 = vmatprep.mubr.msk.f32.mxu1 %vm445_vm5, %v3012_v59 }
 0x31b   :  { %2249 = vmatmul.mubr.msk.f32.vlgmr.msra.gmra.mrb[0].mxu1 %vm445_vm5, %v3014_v60 }
 0x37d   :  { %v3053_v26 = vpop.permute.xlu1 %1963 }
 0x37e   :  { %3744 = vst [vmem:[#allocation33_spill] sm:$0xff] %v3053_v26  ;;  %v3055_v27 = vpop.permute.xlu0 %1945 }
 0x37f   :  { %3745 = vst [vmem:[#allocation34_spill] sm:$0xff] %v3055_v27 }
 0x381   :  { %v3058_v28 = vpop.permute.xlu1 %1947 }
 0x382   :  { %3746 = vst [vmem:[#allocation35_spill] sm:$0xff] %v3058_v28  ;;  %v3061_v29 = vpop.permute.xlu0 %1965 }
 0x383   :  { %3747 = vst [vmem:[#allocation36_spill] sm:$0xff] %v3061_v29 }
 0x385   :  { %v3064_v30 = vpop.permute.xlu1 %1951 }
 0x386   :  { %3748 = vst [vmem:[#allocation37_spill] sm:$0xff] %v3064_v30  ;;  %v3066_v31 = vpop.permute.xlu0 %1949 }
 0x387   :  { %3749 = vst [vmem:[#allocation38_spill] sm:$0xff] %v3066_v31 }
 0x3ee   :  { %v2250_v63 = vpop.f32.mrb[0].mxu1 }
 0x3ef   :  { %535 = vperm.xlu1 %2329, %v2250_v63   ;;  %v3023_v1 = vpop.f32.mrb[1].mxu1  ;;  %v1023_v2 = vrot.slane %v2250_v63, %v926_v0  ;;  %v1035_v6 = vrot.slane %v2250_v63, %v938_v3  ;;  %v1011_v8 = vrot.slane %v2250_v63, %v3028_v5  ;;  %v1047_v9 = vrot.slane %v2250_v63, %v950_v7 }
 0x3f0   :  { %530 = vperm.xlu0 %2331, %v3023_v1   ;;  %v1059_v11 = vrot.slane %v2250_v63, %v962_v10  ;;  %v1071_v13 = vrot.slane %v2250_v63, %v974_v12  ;;  %v1083_v15 = vrot.slane %v2250_v63, %v986_v14  ;;  %v1095_v17 = vrot.slane %v2250_v63, %v998_v16 }
 0x3f1   :  { %v927_v18 = vrot.slane %v3023_v1, %v926_v0  ;;  %v939_v19 = vrot.slane %v3023_v1, %v938_v3  ;;  %v951_v20 = vrot.slane %v3023_v1, %v950_v7  ;;  %v963_v21 = vrot.slane %v3023_v1, %v962_v10 }
 0x3f2   :  { %v975_v22 = vrot.slane %v3023_v1, %v974_v12  ;;  %v915_v23 = vrot.slane %v3023_v1, %v3028_v5  ;;  %v3045_v24 = vrot.slane %v3023_v1, %v986_v14  ;;  %v3049_v25 = vrot.slane %v3023_v1, %v998_v16 }
 0x3f3   :  { %2330 = vset.pattern.permute.xlu1 %v2745_v4 }
 0x3f4   :  { %559 = vperm.xlu1 %2330, %v2250_v63   ;;  %1030 = vbcast.lane.b32.xlu0 %v1023_v2, 266 }
 0x3f5   :  { %2332 = vset.pattern.permute.xlu0 %v2745_v4  ;;  %v1934_v4 = vrot.slane %v2999_v50, 4 }
 0x3f8   :  { %555 = vperm.xlu1 %2330, %v3023_v1   ;;  %1042 = vbcast.lane.b32.xlu0 %v1035_v6, 266 }
 0x3fc   :  { %1014 = vbcast.lane.b32.xlu1 %v1011_v8, 258  ;;  %1054 = vbcast.lane.b32.xlu0 %v1047_v9, 266 }
 0x400   :  { %1018 = vbcast.lane.b32.xlu1 %v1011_v8, 266  ;;  %1066 = vbcast.lane.b32.xlu0 %v1059_v11, 266 }
 0x404   :  { %1026 = vbcast.lane.b32.xlu1 %v1023_v2, 258  ;;  %1078 = vbcast.lane.b32.xlu0 %v1071_v13, 266 }
 0x408   :  { %1038 = vbcast.lane.b32.xlu1 %v1035_v6, 258  ;;  %1090 = vbcast.lane.b32.xlu0 %v1083_v15, 266 }
 0x40c   :  { %1050 = vbcast.lane.b32.xlu1 %v1047_v9, 258  ;;  %1102 = vbcast.lane.b32.xlu0 %v1095_v17, 266 }
 0x410   :  { %1062 = vbcast.lane.b32.xlu1 %v1059_v11, 258  ;;  %1632 = vbcast.lane.b32.xlu0 %v1023_v2, 282 }
 0x414   :  { %1074 = vbcast.lane.b32.xlu1 %v1071_v13, 258  ;;  %1640 = vbcast.lane.b32.xlu0 %v1035_v6, 282 }
 0x418   :  { %1086 = vbcast.lane.b32.xlu1 %v1083_v15, 258  ;;  %1624 = vbcast.lane.b32.xlu0 %v1011_v8, 282 }
 0x41c   :  { %1098 = vbcast.lane.b32.xlu1 %v1095_v17, 258  ;;  %1648 = vbcast.lane.b32.xlu0 %v1047_v9, 282 }
 0x420   :  { %1628 = vbcast.lane.b32.xlu1 %v1023_v2, 274  ;;  %1656 = vbcast.lane.b32.xlu0 %v1059_v11, 282 }
 0x424   :  { %1636 = vbcast.lane.b32.xlu1 %v1035_v6, 274  ;;  %1664 = vbcast.lane.b32.xlu0 %v1071_v13, 282 }
 0x428   :  { %1620 = vbcast.lane.b32.xlu1 %v1011_v8, 274  ;;  %1672 = vbcast.lane.b32.xlu0 %v1083_v15, 282  ;;  %v1940_v8 = vrot.slane %v2995_v44, 3 }
 0x42c   :  { %1644 = vbcast.lane.b32.xlu1 %v1047_v9, 274  ;;  %1680 = vbcast.lane.b32.xlu0 %v1095_v17, 282 }
 0x430   :  { %1652 = vbcast.lane.b32.xlu1 %v1059_v11, 274  ;;  %934 = vbcast.lane.b32.xlu0 %v927_v18, 266 }
 0x434   :  { %1660 = vbcast.lane.b32.xlu1 %v1071_v13, 274  ;;  %946 = vbcast.lane.b32.xlu0 %v939_v19, 266  ;;  %v1941_v13 = vrot.slane %v2995_v44, 4 }
 0x438   :  { %1668 = vbcast.lane.b32.xlu1 %v1083_v15, 274  ;;  %958 = vbcast.lane.b32.xlu0 %v951_v20, 266 }
 0x43c   :  { %1676 = vbcast.lane.b32.xlu1 %v1095_v17, 274  ;;  %970 = vbcast.lane.b32.xlu0 %v963_v21, 266 }
 0x440   :  { %982 = vbcast.lane.b32.xlu0 %v975_v22, 266  ;;  %918 = vbcast.lane.b32.xlu1 %v915_v23, 258 }
 0x444   :  { %994 = vbcast.lane.b32.xlu0 %v3045_v24, 266  ;;  %922 = vbcast.lane.b32.xlu1 %v915_v23, 266 }
 0x448   :  { %1006 = vbcast.lane.b32.xlu0 %v3049_v25, 266  ;;  %930 = vbcast.lane.b32.xlu1 %v927_v18, 258 }
 0x44c   :  { %1568 = vbcast.lane.b32.xlu0 %v927_v18, 282  ;;  %942 = vbcast.lane.b32.xlu1 %v939_v19, 258 }
 0x450   :  { %1576 = vbcast.lane.b32.xlu0 %v939_v19, 282  ;;  %954 = vbcast.lane.b32.xlu1 %v951_v20, 258 }
 0x454   :  { %1560 = vbcast.lane.b32.xlu0 %v915_v23, 282  ;;  %966 = vbcast.lane.b32.xlu1 %v963_v21, 258 }
 0x458   :  { %1584 = vbcast.lane.b32.xlu0 %v951_v20, 282  ;;  %978 = vbcast.lane.b32.xlu1 %v975_v22, 258 }
 0x45c   :  { %1592 = vbcast.lane.b32.xlu0 %v963_v21, 282  ;;  %990 = vbcast.lane.b32.xlu1 %v3045_v24, 258 }
 0x460   :  { %1600 = vbcast.lane.b32.xlu0 %v975_v22, 282  ;;  %1002 = vbcast.lane.b32.xlu1 %v3049_v25, 258 }
 0x464   :  { %1608 = vbcast.lane.b32.xlu0 %v3045_v24, 282  ;;  %1564 = vbcast.lane.b32.xlu1 %v927_v18, 274  ;;  %v1942_v18 = vrot.slane %v2995_v44, 5 }
 0x468   :  { %1616 = vbcast.lane.b32.xlu0 %v3049_v25, 282  ;;  %1572 = vbcast.lane.b32.xlu1 %v939_v19, 274  ;;  %v2746_v19 = vmov 1966171168  }
 0x46c   :  { %1961 = vrot.lane.b32.xlu0 %v2995_v44, %s2744_s11  ;;  %1556 = vbcast.lane.b32.xlu1 %v915_v23, 274 }
 0x46e   :  { %v536_v33 = vpop.permute.xlu1 %535 }
 0x46f   :  { %v531_v35 = vpop.permute.xlu0 %530  ;;  %v543_v36 = vmul.f32 %v2187_v32, %v536_v33 }
 0x470   :  { %1955 = vrot.lane.b32.xlu0 %v1935_v34, %s2744_s11  ;;  %1580 = vbcast.lane.b32.xlu1 %v951_v20, 274  ;;  %v542_v43 = vmul.f32 %v2187_v32, %v531_v35  ;;  %v608_v20 = vunpack.c.l.s4 %v2746_v19 }
 0x471   :  { %v552_v42 = vadd.f32 %v2188_v37, %v543_v36 }
 0x472   :  { %v551_v52 = vadd.f32 %v2188_v37, %v542_v43  ;;  %v609_v32 = vunpack.c.0.s8 %v608_v20 }
 0x473   :  { %v560_v40 = vpop.permute.xlu1 %559  ;;  %v3073_v41 = vpop.permute.xlu0 %1030 }
 0x474   :  { %v567_v45 = vmul.f32 %v2189_v38, %v560_v40  ;;  %1957 = vrot.lane.b32.xlu0 %v1936_v39, %s2744_s11  ;;  %1588 = vbcast.lane.b32.xlu1 %v963_v21, 274  ;;  %v3129_v40 = vsub.s32 %v609_v32, %v3020_v62 }
 0x476   :  { %v3076_v46 = vadd.f32 %v567_v45, %v552_v42 }
 0x477   :  { %v556_v49 = vpop.permute.xlu1 %555  ;;  %v3079_v51 = vpop.permute.xlu0 %1042 }
 0x478   :  { %v573_v48 = vand.u32 2147483647, %v3076_v46  ;;  %v566_v53 = vmul.f32 %v2189_v38, %v556_v49  ;;  %1959 = vrot.lane.b32.xlu0 %v1937_v47, %s2744_s11  ;;  %1596 = vbcast.lane.b32.xlu1 %v975_v22, 274  ;;  %v571_v42 = vmax.f32 %v3076_v46, 0.0 }
 0x47a   :  { %v575_v55 = vsub.f32 0.0, %v573_v48  ;;  %v3083_v54 = vadd.f32 %v566_v53, %v551_v52 }
 0x47b   :  { %v3086_v57 = vpop.permute.xlu1 %1014  ;;  %v3088_v58 = vpop.permute.xlu0 %1054 }
 0x47c   :  { %v578_v61 = vmul.f32 1.442695, %v575_v55  ;;  %v572_v63 = vand.u32 2147483647, %v3083_v54  ;;  %1975 = vrot.lane.b32.xlu0 %v1944_v56, %s2744_s11  ;;  %1604 = vbcast.lane.b32.xlu1 %v3045_v24, 274 }
 0x47e   :  { %2353 = vpow2.f32 %v578_v61  ;;  %v574_v0 = vsub.f32 0.0, %v572_v63  ;;  %v2009_v63 = vld [vmem:[#allocation22] sm:$0xff] }
 0x47f   :  { %v3093_v1 = vpop.permute.xlu1 %1018  ;;  %v3095_v2 = vpop.permute.xlu0 %1066 }
 0x480   :  { %v576_v3 = vmul.f32 1.442695, %v574_v0  ;;  %1612 = vbcast.lane.b32.xlu1 %v3049_v25, 274  ;;  %v1943_v25 = vrot.slane %v2995_v44, 6  ;;  %v2010_v0 = vld [vmem:[#allocation22 + $0x8] sm:$0xff] }
 0x482   :  { %2355 = vpow2.f32 %v576_v3  ;;  %v570_v3 = vmax.f32 %v3083_v54, 0.0  ;;  %v3157_v54 = vld [vmem:[#allocation19 + $0x8] sm:$0xff] }
 0x483   :  { %v3099_v6 = vpop.permute.xlu1 %1026  ;;  %v3101_v7 = vpop.permute.xlu0 %1078 }
 0x484   :  { %1953 = vrot.lane.b32.xlu1 %v1934_v4, %s2744_s11 }
 0x487   :  { %v3105_v9 = vpop.permute.xlu1 %1038  ;;  %v3107_v10 = vpop.permute.xlu0 %1090 }
 0x488   :  { %v2354_v11 = vpop.eup %2353  ;;  %1967 = vrot.lane.b32.xlu1 %v1940_v8, %s2744_s11  ;;  %v2294_v8 = vpack.c.bf16 %v2010_v0, %v2009_v63 }
 0x489   :  { %v589_v12 = vadd.f32 1.0, %v2354_v11  ;;  %v592_v17 = vmul.f32 -0.5, %v2354_v11  ;;  %v595_v33 = vand.u32 2147483647, %v2354_v11 }
 0x48a   :  { %2295 = vmatprep.subr.bf16.mxu0 %v2294_v8 }
 0x48b   :  { %2357 = vlog2.f32 %v589_v12  ;;  %v3111_v50 = vpop.permute.xlu1 %1050  ;;  %v3113_v14 = vpop.permute.xlu0 %1102  ;;  %v593_v23 = vadd.f32 1.0, %v592_v17  ;;  %vm596_vm6 = vcmp.lt.f32.partialorder %v595_v33, 0.0004427343  ;;  %2297 = vmatpush3.bf16.msra.mxu0 %v2294_v8 }
 0x48c   :  { %v2356_v15 = vpop.eup %2355  ;;  %1969 = vrot.lane.b32.xlu1 %v1941_v13, %s2744_s11 }
 0x48d   :  { %v580_v16 = vadd.f32 1.0, %v2356_v15  ;;  %v583_v24 = vmul.f32 -0.5, %v2356_v15  ;;  %v594_v38 = vmul.f32 %v2354_v11, %v593_v23  ;;  %v586_v43 = vand.u32 2147483647, %v2356_v15 }
 0x48f   :  { %2359 = vlog2.f32 %v580_v16  ;;  %v3117_v21 = vpop.permute.xlu1 %1062  ;;  %v3119_v22 = vpop.permute.xlu0 %1632  ;;  %v584_v39 = vadd.f32 1.0, %v583_v24  ;;  %vm587_vm7 = vcmp.lt.f32.partialorder %v586_v43, 0.0004427343 }
 0x490   :  { %1971 = vrot.lane.b32.xlu1 %v1942_v18, %s2744_s11  ;;  %v3155_v18 = vld [vmem:[#allocation19] sm:$0xff] }
 0x491   :  { %v585_v53 = vmul.f32 %v2356_v15, %v584_v39 }
 0x493   :  { %v3123_v34 = vpop.permute.xlu1 %1074  ;;  %v3125_v35 = vpop.permute.xlu0 %1640 }
 0x494   :  { %3750 = vst [vmem:[#allocation39_spill] sm:$0xff] %v3125_v35  ;;  %1973 = vrot.lane.b32.xlu1 %v1943_v25, %s2744_s11 }
 0x495   :  { %v2358_v36 = vpop.eup %2357 }
 0x496   :  { %v591_v37 = vmul.f32 0.6931472, %v2358_v36 }
 0x497   :  { %v3132_v44 = vpop.permute.xlu1 %1086  ;;  %v3134_v45 = vpop.permute.xlu0 %1624 }
 0x498   :  { %v597_v47 = vsel %vm596_vm6, %v594_v38, %v591_v37 }
 0x499   :  { %v2360_v49 = vpop.eup %2359  ;;  %v599_v52 = vadd.f32 %v597_v47, %v571_v42 }
 0x49a   :  { %v582_v48 = vmul.f32 0.6931472, %v2360_v49 }
 0x49b   :  { %v655_v55 = vcombine.high %v599_v52, %v599_v52  ;;  %v662_v56 = vrot.slane %v599_v52, %v3129_v40  ;;  %v3138_v61 = vmul.f32 %v599_v52, %v3014_v60  ;;  %v3140_v62 = vpop.permute.xlu1 %1098  ;;  %v3142_v46 = vpop.permute.xlu0 %1648 }
 0x49c   :  { %3751 = vst [vmem:[#allocation40_spill] sm:$0xff] %v3142_v46  ;;  %v588_v4 = vsel %vm587_vm7, %v585_v53, %v582_v48 }
 0x49d   :  { %v669_v11 = vrot.slane %v655_v55, %v3129_v40  ;;  %v670_v12 = vcombine.high %v662_v56, %v662_v56  ;;  %v678_v13 = vrot.slane %v662_v56, %v3129_v40  ;;  %v3149_v15 = vrot.slane %v3138_v61, %v3129_v40 }
 0x49e   :  { %v3151_v16 = vadd.f32 %v588_v4, %v570_v3 }
 0x49f   :  { %v671_v19 = vcombine.high %v669_v11, %v669_v11  ;;  %v685_v20 = vrot.slane %v669_v11, %v3129_v40  ;;  %v692_v23 = vrot.slane %v670_v12, %v3129_v40  ;;  %v700_v24 = vcombine.high %v678_v13, %v678_v13  ;;  %v3161_v25 = vpop.permute.xlu1 %1628  ;;  %v3163_v32 = vpop.permute.xlu0 %1656 }
 0x4a0   :  { %3752 = vst [vmem:[#allocation41_spill] sm:$0xff] %v3163_v32  ;;  %v739_v33 = vrot.slane %v678_v13, %v3028_v5  ;;  %v1170_v36 = vcombine.high %v3149_v15, %v3149_v15  ;;  %v606_v37 = vcombine.high %v3151_v16, %v3151_v16  ;;  %v3172_v38 = vrot.slane %v3151_v16, %v3129_v40 }
 0x4a1   :  { %v699_v39 = vrot.slane %v671_v19, %v3129_v40  ;;  %v701_v42 = vcombine.high %v685_v20, %v685_v20  ;;  %v702_v43 = vcombine.high %v692_v23, %v692_v23  ;;  %v743_v47 = vrot.slane %v692_v23, %v3028_v5 }
 0x4a2   :  { %v747_v49 = vrot.slane %v700_v24, %v3028_v5  ;;  %v755_v52 = vrot.slane %v685_v20, %v3028_v5  ;;  %v800_v48 = vmul.f32 %v739_v33, %v3155_v18  ;;  %v801_v53 = vmul.f32 %v739_v33, %v3157_v54 }
 0x4a3   :  { %v703_v55 = vcombine.high %v699_v39, %v699_v39  ;;  %v751_v56 = vrot.slane %v702_v43, %v3028_v5  ;;  %v759_v63 = vrot.slane %v699_v39, %v3028_v5  ;;  %v763_v0 = vrot.slane %v701_v42, %v3028_v5  ;;  %v3183_v3 = vpop.permute.xlu1 %1636  ;;  %v3185_v4 = vpop.permute.xlu0 %1664 }
 0x4a4   :  { %3753 = vst [vmem:[#allocation42_spill] sm:$0xff] %v3185_v4  ;;  %v802_v8 = vmul.f32 %v743_v47, %v3155_v18  ;;  %v803_v11 = vmul.f32 %v743_v47, %v3157_v54  ;;  %v804_v12 = vmul.f32 %v747_v49, %v3155_v18  ;;  %v805_v13 = vmul.f32 %v747_v49, %v3157_v54 }
 0x4a5   :  { %v767_v19 = vrot.slane %v703_v55, %v3028_v5  ;;  %v806_v20 = vmul.f32 %v751_v56, %v3155_v18  ;;  %v807_v23 = vmul.f32 %v751_v56, %v3157_v54  ;;  %v808_v24 = vmul.f32 %v755_v52, %v3155_v18 }
 0x4a6   :  { %v809_v33 = vmul.f32 %v755_v52, %v3157_v54  ;;  %v810_v39 = vmul.f32 %v759_v63, %v3155_v18  ;;  %v811_v42 = vmul.f32 %v759_v63, %v3157_v54  ;;  %v812_v43 = vmul.f32 %v763_v0, %v3155_v18 }
 0x4a7   :  { %v813_v47 = vmul.f32 %v763_v0, %v3157_v54  ;;  %v814_v49 = vmul.f32 %v767_v19, %v3155_v18  ;;  %v815_v55 = vmul.f32 %v767_v19, %v3157_v54  ;;  %v848_v17 = vmul.f32 1.442695, %v800_v48  ;;  %v3202_v30 = vpop.permute.xlu1 %1620  ;;  %v3204_v56 = vpop.permute.xlu0 %1672 }
 0x4a8   :  { %3754 = vst [vmem:[#allocation43_spill] sm:$0xff] %v3204_v56  ;;  %v850_v27 = vmul.f32 1.442695, %v801_v53  ;;  %v852_v31 = vmul.f32 1.442695, %v802_v8  ;;  %v3207_v28 = vrot.slane %v1170_v36, %v3129_v40 }
 0x4a9   :  { %v854_v52 = vmul.f32 1.442695, %v803_v11  ;;  %2361 = vpow2.f32 %v848_v17  ;;  %v856_v63 = vmul.f32 1.442695, %v804_v12  ;;  %v858_v29 = vmul.f32 1.442695, %v805_v13 }
 0x4aa   :  { %v860_v26 = vmul.f32 1.442695, %v806_v20  ;;  %2363 = vpow2.f32 %v850_v27  ;;  %v862_v0 = vmul.f32 1.442695, %v807_v23  ;;  %v864_v4 = vmul.f32 1.442695, %v808_v24 }
 0x4ab   :  { %v866_v32 = vmul.f32 1.442695, %v809_v33  ;;  %2365 = vpow2.f32 %v852_v31  ;;  %v868_v48 = vmul.f32 1.442695, %v810_v39  ;;  %v870_v19 = vmul.f32 1.442695, %v811_v42  ;;  %v3209_v35 = vpop.permute.xlu1 %1644  ;;  %v3211_v53 = vpop.permute.xlu0 %1680 }
 0x4ac   :  { %v872_v46 = vmul.f32 1.442695, %v812_v43  ;;  %3755 = vst [vmem:[#allocation44_spill] sm:$0xff] %v3211_v53  ;;  %2367 = vpow2.f32 %v854_v52  ;;  %v874_v8 = vmul.f32 1.442695, %v813_v47  ;;  %v3215_v17 = vrot.slane %v3207_v28, %v3028_v5 }
 0x4ad   :  { %v876_v36 = vmul.f32 1.442695, %v814_v49  ;;  %v878_v11 = vmul.f32 1.442695, %v815_v55  ;;  %2369 = vpow2.f32 %v856_v63  ;;  %v620_v27 = vrot.slane %v606_v37, %v3129_v40 }
 0x4ae   :  { %v621_v31 = vcombine.high %v3172_v38, %v3172_v38  ;;  %2371 = vpow2.f32 %v858_v29  ;;  %v629_v12 = vrot.slane %v3172_v38, %v3129_v40  ;;  %v3224_v13 = vrot.slane %v3149_v15, %v3129_v40 }
 0x4af   :  { %2373 = vpow2.f32 %v860_v26  ;;  %v1303_v23 = vmul.f32 %v3215_v17, %v3073_v41  ;;  %v622_v24 = vcombine.high %v620_v27, %v620_v27  ;;  %v636_v37 = vrot.slane %v620_v27, %v3129_v40  ;;  %v3231_v33 = vpop.permute.xlu1 %1652  ;;  %v3233_v29 = vpop.permute.xlu0 %934 }
 0x4b0   :  { %2375 = vpow2.f32 %v862_v0  ;;  %v643_v38 = vrot.slane %v621_v31, %v3129_v40  ;;  %v651_v39 = vcombine.high %v629_v12, %v629_v12  ;;  %v707_v15 = vrot.slane %v629_v12, %v3028_v5 }
 0x4b1   :  { %2377 = vpow2.f32 %v864_v4  ;;  %1335 = vst.msk [vmem:[#allocation3 + $0x98] sm:$0xff] %vm445_vm5, %v1303_v23  ;;  %v650_v26 = vrot.slane %v622_v24, %v3129_v40  ;;  %v652_v42 = vcombine.high %v636_v37, %v636_v37  ;;  %v723_v41 = vrot.slane %v636_v37, %v3028_v5 }
 0x4b2   :  { %2379 = vpow2.f32 %v866_v32  ;;  %v653_v43 = vcombine.high %v643_v38, %v643_v38  ;;  %v711_v47 = vrot.slane %v643_v38, %v3028_v5  ;;  %v715_v49 = vrot.slane %v651_v39, %v3028_v5 }
 0x4b3   :  { %v2362_v55 = vpop.eup %2361  ;;  %2381 = vpow2.f32 %v868_v48  ;;  %v654_v52 = vcombine.high %v650_v26, %v650_v26  ;;  %v727_v63 = vrot.slane %v650_v26, %v3028_v5  ;;  %v731_v4 = vrot.slane %v652_v42, %v3028_v5  ;;  %v3244_v0 = vpop.permute.xlu1 %1660 }
 0x4b4   :  { %3756 = vst [vmem:[#allocation45_spill] sm:$0xff] %v3244_v0  ;;  %v3246_v27 = vpop.permute.xlu0 %946  ;;  %v2364_v31 = vpop.eup %2363  ;;  %2383 = vpow2.f32 %v870_v19  ;;  %896 = vst.msk [vmem:[#allocation2 + $0x80] sm:$0xff] %vm445_vm5, %v2362_v55  ;;  %v719_v32 = vrot.slane %v653_v43, %v3028_v5  ;;  %v784_v12 = vmul.f32 %v707_v15, %v3155_v18  ;;  %v785_v23 = vmul.f32 %v707_v15, %v3157_v54 }
 0x4b5   :  { %v2366_v48 = vpop.eup %2365  ;;  %2385 = vpow2.f32 %v872_v46  ;;  %897 = vst.msk [vmem:[#allocation2 + $0x88] sm:$0xff] %vm445_vm5, %v2364_v31  ;;  %v735_v24 = vrot.slane %v654_v52, %v3028_v5  ;;  %v786_v37 = vmul.f32 %v711_v47, %v3155_v18  ;;  %v787_v38 = vmul.f32 %v711_v47, %v3157_v54 }
 0x4b6   :  { %v2368_v39 = vpop.eup %2367  ;;  %2387 = vpow2.f32 %v874_v8  ;;  %898 = vst.msk [vmem:[#allocation2 + $0x90] sm:$0xff] %vm445_vm5, %v2366_v48  ;;  %v788_v19 = vmul.f32 %v715_v49, %v3155_v18  ;;  %v789_v26 = vmul.f32 %v715_v49, %v3157_v54  ;;  %v790_v15 = vmul.f32 %v719_v32, %v3155_v18 }
 0x4b7   :  { %v2370_v42 = vpop.eup %2369  ;;  %2389 = vpow2.f32 %v876_v36  ;;  %899 = vst.msk [vmem:[#allocation2 + $0x98] sm:$0xff] %vm445_vm5, %v2368_v39  ;;  %v791_v46 = vmul.f32 %v719_v32, %v3157_v54  ;;  %v792_v43 = vmul.f32 %v723_v41, %v3155_v18  ;;  %v793_v47 = vmul.f32 %v723_v41, %v3157_v54  ;;  %v3264_v55 = vpop.permute.xlu1 %1668 }
 0x4b8   :  { %3757 = vst [vmem:[#allocation46_spill] sm:$0xff] %v3264_v55  ;;  %v3266_v8 = vpop.permute.xlu0 %958  ;;  %v2372_v52 = vpop.eup %2371  ;;  %2391 = vpow2.f32 %v878_v11  ;;  %900 = vst.msk [vmem:[#allocation2 + $0xa0] sm:$0xff] %vm445_vm5, %v2370_v42  ;;  %v794_v49 = vmul.f32 %v727_v63, %v3155_v18  ;;  %v795_v36 = vmul.f32 %v727_v63, %v3157_v54  ;;  %v796_v31 = vmul.f32 %v731_v4, %v3155_v18 }
 0x4b9   :  { %v2374_v48 = vpop.eup %2373  ;;  %901 = vst.msk [vmem:[#allocation2 + $0xa8] sm:$0xff] %vm445_vm5, %v2372_v52  ;;  %v797_v32 = vmul.f32 %v731_v4, %v3157_v54  ;;  %v798_v41 = vmul.f32 %v735_v24, %v3155_v18  ;;  %v799_v39 = vmul.f32 %v735_v24, %v3157_v54  ;;  %v816_v20 = vmul.f32 1.442695, %v784_v12 }
 0x4ba   :  { %v2376_v53 = vpop.eup %2375  ;;  %902 = vst.msk [vmem:[#allocation2 + $0xb0] sm:$0xff] %vm445_vm5, %v2374_v48  ;;  %v818_v11 = vmul.f32 1.442695, %v785_v23  ;;  %v820_v42 = vmul.f32 1.442695, %v786_v37  ;;  %v1200_v63 = vcombine.high %v3224_v13, %v3224_v13 }
 0x4bb   :  { %v822_v56 = vmul.f32 1.442695, %v787_v38  ;;  %v2378_v55 = vpop.eup %2377  ;;  %903 = vst.msk [vmem:[#allocation2 + $0xb8] sm:$0xff] %vm445_vm5, %v2376_v53  ;;  %2393 = vpow2.f32 %v816_v20  ;;  %v824_v52 = vmul.f32 1.442695, %v788_v19  ;;  %v3280_v18 = vpop.permute.xlu1 %1676 }
 0x4bc   :  { %v826_v4 = vmul.f32 1.442695, %v789_v26  ;;  %v828_v0 = vmul.f32 1.442695, %v790_v15  ;;  %v3282_v54 = vpop.permute.xlu0 %970  ;;  %v2380_v12 = vpop.eup %2379  ;;  %904 = vst.msk [vmem:[#allocation2 + $0xc0] sm:$0xff] %vm445_vm5, %v2378_v55  ;;  %2395 = vpow2.f32 %v818_v11  ;;  %v1351_v48 = vld [vmem:[#allocation2 + $0x88] sm:$0xff] }
 0x4bd   :  { %v830_v23 = vmul.f32 1.442695, %v791_v46  ;;  %v832_v24 = vmul.f32 1.442695, %v792_v43  ;;  %v834_v37 = vmul.f32 1.442695, %v793_v47  ;;  %v2382_v38 = vpop.eup %2381  ;;  %2397 = vpow2.f32 %v820_v42 }
 0x4be   :  { %905 = vst.msk [vmem:[#allocation2 + $0xc8] sm:$0xff] %vm445_vm5, %v2380_v12  ;;  %v836_v53 = vmul.f32 1.442695, %v794_v49  ;;  %v3286_v20 = vmul.f32 1.442695, %v795_v36  ;;  %v2384_v26 = vpop.eup %2383  ;;  %906 = vst.msk [vmem:[#allocation2 + $0xd0] sm:$0xff] %vm445_vm5, %v2382_v38  ;;  %2399 = vpow2.f32 %v822_v56  ;;  %v1247_v47 = vrot.slane %v1200_v63, %v3028_v5 }
 0x4bf   :  { %v3288_v19 = vmul.f32 1.442695, %v796_v31  ;;  %v3291_v15 = vmul.f32 1.442695, %v797_v32  ;;  %v3293_v55 = vmul.f32 1.442695, %v798_v41  ;;  %v2386_v43 = vpop.eup %2385  ;;  %2401 = vpow2.f32 %v824_v52  ;;  %v3307_v41 = vpop.permute.xlu1 %918 }
 0x4c0   :  { %v3295_v46 = vmul.f32 1.442695, %v799_v39  ;;  %907 = vst.msk [vmem:[#allocation2 + $0xd8] sm:$0xff] %vm445_vm5, %v2384_v26  ;;  %v1239_v49 = vrot.slane %v3224_v13, %v3028_v5  ;;  %v1350_v36 = vld [vmem:[#allocation2 + $0x80] sm:$0xff]  ;;  %v3758_v56 = vcombine.high %v3207_v28, %v3207_v28  ;;  %v3305_v32 = vpop.permute.xlu0 %982  ;;  %v2388_v39 = vpop.eup %2387  ;;  %908 = vst.msk [vmem:[#allocation2 + $0xe0] sm:$0xff] %vm445_vm5, %v2386_v43  ;;  %2403 = vpow2.f32 %v826_v4 }
 0x4c1   :  { %v3310_v11 = vmul.f32 0.0, %v1350_v36  ;;  %v3312_v42 = vmul.f32 0.0, %v1351_v48  ;;  %v3759_v13 = vcombine.high %v3138_v61, %v3138_v61  ;;  %v2390_v28 = vpop.eup %2389  ;;  %909 = vst.msk [vmem:[#allocation2 + $0xe8] sm:$0xff] %vm445_vm5, %v2388_v39  ;;  %2405 = vpow2.f32 %v828_v0  ;;  %v2011_v4 = vld [vmem:[#allocation22 + $0x10] sm:$0xff]  ;;  %v2013_v0 = vld [vmem:[#allocation22 + $0x20] sm:$0xff]  ;;  %v2014_v48 = vld [vmem:[#allocation22 + $0x28] sm:$0xff] }
 0x4c2   :  { %v1251_v31 = vrot.slane %v3758_v56, %v3028_v5  ;;  %v1305_v52 = vmul.f32 %v1247_v47, %v3079_v51  ;;  %v1300_v12 = vmul.f32 %v1239_v49, %v3086_v57  ;;  %v2392_v26 = vpop.eup %2391  ;;  %910 = vst.msk [vmem:[#allocation2 + $0xf0] sm:$0xff] %vm445_vm5, %v2390_v28  ;;  %2407 = vpow2.f32 %v830_v23  ;;  %v2012_v56 = vld [vmem:[#allocation22 + $0x18] sm:$0xff] }
 0x4c3   :  { %v1169_v63 = vrot.slane %v3759_v13, %v3129_v40  ;;  %v1301_v43 = vmul.f32 %v1239_v49, %v3093_v1  ;;  %v1302_v36 = vmul.f32 %v3215_v17, %v3099_v6  ;;  %911 = vst.msk [vmem:[#allocation2 + $0xf8] sm:$0xff] %vm445_vm5, %v2392_v26  ;;  %2409 = vpow2.f32 %v832_v24  ;;  %v3335_v6 = vpop.permute.xlu1 %922 }
 0x4c4   :  { %v1307_v38 = vmul.f32 %v1251_v31, %v3088_v58  ;;  %1337 = vst.msk [vmem:[#allocation3 + $0xa8] sm:$0xff] %vm445_vm5, %v1305_v52  ;;  %1332 = vst.msk [vmem:[#allocation3 + $0x80] sm:$0xff] %vm445_vm5, %v1300_v12  ;;  %v1304_v57 = vmul.f32 %v1247_v47, %v3105_v9  ;;  %v1306_v58 = vmul.f32 %v1251_v31, %v3111_v50  ;;  %v3333_v1 = vpop.permute.xlu0 %994  ;;  %2411 = vpow2.f32 %v834_v37 }
 0x4c5   :  { %v1185_v61 = vrot.slane %v1169_v63, %v3129_v40  ;;  %v1171_v51 = vcombine.high %v1169_v63, %v1169_v63  ;;  %1333 = vst.msk [vmem:[#allocation3 + $0x88] sm:$0xff] %vm445_vm5, %v1301_v43  ;;  %1334 = vst.msk [vmem:[#allocation3 + $0x90] sm:$0xff] %vm445_vm5, %v1302_v36  ;;  %v600_v24 = vmul.f32 %v3151_v16, %v3012_v59  ;;  %v2394_v49 = vpop.eup %2393  ;;  %2413 = vpow2.f32 %v836_v53  ;;  %v2015_v36 = vld [vmem:[#allocation22 + $0x30] sm:$0xff] }
 0x4c6   :  { %1339 = vst.msk [vmem:[#allocation3 + $0xb8] sm:$0xff] %vm445_vm5, %v1307_v38  ;;  %1336 = vst.msk [vmem:[#allocation3 + $0xa0] sm:$0xff] %vm445_vm5, %v1304_v57  ;;  %v2298_v50 = vpack.c.bf16 %v2012_v56, %v2011_v4  ;;  %v2302_v37 = vpack.c.bf16 %v2014_v48, %v2013_v0  ;;  %v2396_v47 = vpop.eup %2395  ;;  %2415 = vpow2.f32 %v3286_v20  ;;  %v3364_v4 = vld [vmem:[#allocation21] ss:$0 sm:$0xff] }
 0x4c7   :  { %v1255_v17 = vrot.slane %v1185_v61, %v3028_v5  ;;  %v1201_v23 = vcombine.high %v1185_v61, %v1185_v61  ;;  %v1199_v9 = vrot.slane %v1171_v51, %v3129_v40  ;;  %1338 = vst.msk [vmem:[#allocation3 + $0xb0] sm:$0xff] %vm445_vm5, %v1306_v58  ;;  %880 = vst.msk [vmem:[#allocation2] sm:$0xff] %vm445_vm5, %v2394_v49  ;;  %v2398_v53 = vpop.eup %2397  ;;  %2417 = vpow2.f32 %v3288_v19  ;;  %v3356_v20 = vpop.permute.xlu1 %930  ;;  %v2016_v56 = vld [vmem:[#allocation22 + $0x38] sm:$0xff] }
 0x4c8   :  { %881 = vst.msk [vmem:[#allocation2 + $0x8] sm:$0xff] %vm445_vm5, %v2396_v47  ;;  %v1113_v28 = vrot.slane %v600_v24, %v3129_v40  ;;  %v3354_v52 = vpop.permute.xlu0 %1006  ;;  %2299 = vmatprep.subr.bf16.mxu0 %v2298_v50  ;;  %2419 = vpow2.f32 %v3291_v15  ;;  %882 = vst.msk [vmem:[#allocation2 + $0x10] sm:$0xff] %vm445_vm5, %v2398_v53  ;;  %v1106_v12 = vcombine.high %v600_v24, %v600_v24 }
 0x4c9   :  { %v1309_v31 = vmul.f32 %v1255_v17, %v3095_v2  ;;  %v1263_v39 = vrot.slane %v1201_v23, %v3028_v5  ;;  %v1308_v16 = vmul.f32 %v1255_v17, %v3117_v21  ;;  %v1259_v13 = vrot.slane %v1199_v9, %v3028_v5  ;;  %v2400_v2 = vpop.eup %2399  ;;  %2301 = vmatpush3.bf16.msra.mxu0 %v2298_v50  ;;  %v1371_v23 = vld [vmem:[#allocation2 + $0x90] sm:$0xff] }
 0x4ca   :  { %v1203_v63 = vcombine.high %v1199_v9, %v1199_v9  ;;  %v2402_v38 = vpop.eup %2401  ;;  %2421 = vpow2.f32 %v3293_v55  ;;  %883 = vst.msk [vmem:[#allocation2 + $0x18] sm:$0xff] %vm445_vm5, %v2400_v2  ;;  %2303 = vmatprep.subr.bf16.mxu0 %v2302_v37  ;;  %v1121_v55 = vcombine.high %v1113_v28, %v1113_v28  ;;  %v1129_v61 = vrot.slane %v1113_v28, %v3129_v40  ;;  %v1381_v28 = vld [vmem:[#allocation3 + $0x98] sm:$0xff] }
 0x4cb   :  { %1341 = vst.msk [vmem:[#allocation3 + $0xc8] sm:$0xff] %vm445_vm5, %v1309_v31  ;;  %v1313_v21 = vmul.f32 %v1263_v39, %v3107_v10  ;;  %1340 = vst.msk [vmem:[#allocation3 + $0xc0] sm:$0xff] %vm445_vm5, %v1308_v16  ;;  %v1312_v19 = vmul.f32 %v1263_v39, %v3132_v44  ;;  %v1311_v15 = vmul.f32 %v1259_v13, %v3101_v7  ;;  %v2404_v10 = vpop.eup %2403  ;;  %2423 = vpow2.f32 %v3295_v46  ;;  %v1358_v44 = vld [vmem:[#allocation3 + $0x80] sm:$0xff]  ;;  %v3383_v57 = vpop.permute.xlu1 %942 }
 0x4cc   :  { %v1267_v26 = vrot.slane %v1203_v63, %v3028_v5  ;;  %v1310_v43 = vmul.f32 %v1259_v13, %v3123_v34  ;;  %884 = vst.msk [vmem:[#allocation2 + $0x20] sm:$0xff] %vm445_vm5, %v2402_v38  ;;  %v1120_v7 = vrot.slane %v1106_v12, %v3129_v40  ;;  %v2406_v0 = vpop.eup %2405  ;;  %885 = vst.msk [vmem:[#allocation2 + $0x28] sm:$0xff] %vm445_vm5, %v2404_v10  ;;  %v1359_v46 = vld [vmem:[#allocation3 + $0x88] sm:$0xff]  ;;  %v3391_v9 = vpop.permute.xlu0 %1568 }
 0x4cd   :  { %1345 = vst.msk [vmem:[#allocation3 + $0xe8] sm:$0xff] %vm445_vm5, %v1313_v21  ;;  %1344 = vst.msk [vmem:[#allocation3 + $0xe0] sm:$0xff] %vm445_vm5, %v1312_v19  ;;  %v1362_v34 = vadd.f32 %v1358_v44, %v3310_v11  ;;  %v2408_v58 = vpop.eup %2407  ;;  %v1363_v17 = vadd.f32 %v1359_v46, %v3312_v42  ;;  %v1143_v24 = vrot.slane %v1121_v55, %v3129_v40  ;;  %2305 = vmatpush3.bf16.msra.mxu0 %v2302_v37  ;;  %v1372_v42 = vld [vmem:[#allocation2 + $0x98] sm:$0xff]  ;;  %v1402_v46 = vld [vmem:[#allocation3 + $0xa0] sm:$0xff] }
 0x4ce   :  { %1343 = vst.msk [vmem:[#allocation3 + $0xd8] sm:$0xff] %vm445_vm5, %v1311_v15  ;;  %v1315_v48 = vmul.f32 %v1267_v26, %v3113_v14  ;;  %1342 = vst.msk [vmem:[#allocation3 + $0xd0] sm:$0xff] %vm445_vm5, %v1310_v43  ;;  %v1314_v51 = vmul.f32 %v1267_v26, %v3140_v62  ;;  %v1151_v11 = vcombine.high %v1129_v61, %v1129_v61  ;;  %v2410_v14 = vpop.eup %2409  ;;  %v1393_v43 = vld [vmem:[#allocation2 + $0xa0] sm:$0xff] }
 0x4cf   :  { %886 = vst.msk [vmem:[#allocation2 + $0x30] sm:$0xff] %vm445_vm5, %v2406_v0  ;;  %v3389_v49 = vrot.slane %v1120_v7, %v3129_v40  ;;  %v3395_v62 = vmul.f32 %v3364_v4, %v3012_v59  ;;  %887 = vst.msk [vmem:[#allocation2 + $0x38] sm:$0xff] %vm445_vm5, %v2408_v58  ;;  %v1375_v50 = vmul.f32 %v1371_v23, %v1362_v34  ;;  %v2412_v39 = vpop.eup %2411  ;;  %v1380_v59 = vld [vmem:[#allocation3 + $0x90] sm:$0xff]  ;;  %v955_v38 = vpop.permute.xlu1 %954 }
 0x4d0   :  { %1366 = vst.msk [vmem:[#allocation3 + $0x80] sm:$0xff] %vm445_vm5, %v1362_v34  ;;  %1347 = vst.msk [vmem:[#allocation3 + $0xf8] sm:$0xff] %vm445_vm5, %v1315_v48  ;;  %v1122_v47 = vcombine.high %v1120_v7, %v1120_v7  ;;  %v2306_v31 = vpack.c.bf16 %v2016_v56, %v2015_v36  ;;  %v1376_v37 = vmul.f32 %v1372_v42, %v1363_v17  ;;  %v2414_v63 = vpop.eup %2413  ;;  %v3435_v48 = vpop.permute.xlu0 %1576 }
 0x4d1   :  { %1346 = vst.msk [vmem:[#allocation3 + $0xf0] sm:$0xff] %vm445_vm5, %v1314_v51  ;;  %888 = vst.msk [vmem:[#allocation2 + $0x40] sm:$0xff] %vm445_vm5, %v2410_v14  ;;  %v1211_v16 = vrot.slane %v1143_v24, %v3028_v5  ;;  %v1215_v53 = vrot.slane %v1151_v11, %v3028_v5  ;;  %v1153_v13 = vcombine.high %v1143_v24, %v1143_v24  ;;  %v2416_v15 = vpop.eup %2415 }
 0x4d2   :  { %1367 = vst.msk [vmem:[#allocation3 + $0x88] sm:$0xff] %vm445_vm5, %v1363_v17  ;;  %889 = vst.msk [vmem:[#allocation2 + $0x48] sm:$0xff] %vm445_vm5, %v2412_v39  ;;  %v1384_v2 = vadd.f32 %v1380_v59, %v1375_v50  ;;  %v3408_v21 = vrot.slane %v3389_v49, %v3028_v5  ;;  %v1150_v19 = vrot.slane %v1122_v47, %v3129_v40  ;;  %2307 = vmatprep.subr.bf16.mxu0 %v2306_v31  ;;  %v2418_v7 = vpop.eup %2417  ;;  %v1394_v40 = vld [vmem:[#allocation2 + $0xa8] sm:$0xff] }
 0x4d3   :  { %v1207_v12 = vrot.slane %v1129_v61, %v3028_v5  ;;  %890 = vst.msk [vmem:[#allocation2 + $0x50] sm:$0xff] %vm445_vm5, %v2414_v63  ;;  %v1385_v26 = vadd.f32 %v1381_v28, %v1376_v37  ;;  %v1287_v10 = vmul.f32 %v1211_v16, %v3233_v29  ;;  %v1289_v44 = vmul.f32 %v1215_v53, %v3246_v27  ;;  %v2420_v0 = vpop.eup %2419  ;;  %v967_v23 = vpop.permute.xlu1 %966  ;;  %v1425_v63 = vld [vmem:[#allocation3 + $0xb8] sm:$0xff] }
 0x4d4   :  { %v1219_v55 = vrot.slane %v1153_v13, %v3028_v5  ;;  %2309 = vmatpush3.bf16.msra.mxu0 %v2306_v31  ;;  %891 = vst.msk [vmem:[#allocation2 + $0x58] sm:$0xff] %vm445_vm5, %v2416_v15  ;;  %1388 = vst.msk [vmem:[#allocation3 + $0x90] sm:$0xff] %vm445_vm5, %v1384_v2  ;;  %v1397_v61 = vmul.f32 %v1393_v43, %v1384_v2  ;;  %v1293_v36 = vmul.f32 %v3408_v21, %v3282_v54  ;;  %v2422_v51 = vpop.eup %2421  ;;  %v1438_v43 = vld [vmem:[#allocation2 + $0xc8] sm:$0xff] }
 0x4d5   :  { %v3421_v56 = vrot.slane %v1150_v19, %v3028_v5  ;;  %v1284_v29 = vmul.f32 %v1207_v12, %v3307_v41  ;;  %v3426_v27 = vmul.f32 %v3364_v4, %v3014_v60  ;;  %892 = vst.msk [vmem:[#allocation2 + $0x60] sm:$0xff] %vm445_vm5, %v2418_v7  ;;  %1389 = vst.msk [vmem:[#allocation3 + $0x98] sm:$0xff] %vm445_vm5, %v1385_v26  ;;  %v1403_v60 = vld [vmem:[#allocation3 + $0xa8] sm:$0xff]  ;;  %v2424_v24 = vpop.eup %2423 }
 0x4d6   :  { %v1398_v34 = vmul.f32 %v1394_v40, %v1385_v26  ;;  %1319 = vst.msk [vmem:[#allocation3 + $0x18] sm:$0xff] %vm445_vm5, %v1287_v10  ;;  %1321 = vst.msk [vmem:[#allocation3 + $0x28] sm:$0xff] %vm445_vm5, %v1289_v44  ;;  %v1291_v54 = vmul.f32 %v1219_v55, %v3266_v8  ;;  %v1152_v41 = vcombine.high %v3389_v49, %v3389_v49  ;;  %v1415_v49 = vld [vmem:[#allocation2 + $0xb0] sm:$0xff] }
 0x4d7   :  { %893 = vst.msk [vmem:[#allocation2 + $0x68] sm:$0xff] %vm445_vm5, %v2420_v0  ;;  %v1406_v4 = vadd.f32 %v1402_v46, %v1397_v61  ;;  %1325 = vst.msk [vmem:[#allocation3 + $0x48] sm:$0xff] %vm445_vm5, %v1293_v36  ;;  %v1295_v58 = vmul.f32 %v3421_v56, %v3305_v32  ;;  %v1285_v17 = vmul.f32 %v1207_v12, %v3335_v6  ;;  %v1538_v14 = vld [vmem:[#allocation3 + $0x80] sm:$0xff]  ;;  %v1416_v6 = vld [vmem:[#allocation2 + $0xb8] sm:$0xff]  ;;  %v1873_v46 = vrot.slane %v3395_v62, 5 }
 0x4d8   :  { %1316 = vst.msk [vmem:[#allocation3] sm:$0xff] %vm445_vm5, %v1284_v29  ;;  %v1154_v8 = vcombine.high %v1150_v19, %v1150_v19  ;;  %894 = vst.msk [vmem:[#allocation2 + $0x70] sm:$0xff] %vm445_vm5, %v2422_v51  ;;  %v1407_v11 = vadd.f32 %v1403_v60, %v1398_v34  ;;  %v3446_v42 = vrot.slane %v1152_v41, %v3028_v5  ;;  %v1869_v19 = vrot.slane %v3395_v62, 1  ;;  %v1349_v61 = vld [vmem:[#allocation2 + $0x8] sm:$0xff]  ;;  %v1446_v29 = vld [vmem:[#allocation3 + $0xc0] sm:$0xff] }
 0x4d9   :  { %1323 = vst.msk [vmem:[#allocation3 + $0x38] sm:$0xff] %vm445_vm5, %v1291_v54  ;;  %v1286_v50 = vmul.f32 %v1211_v16, %v3356_v20  ;;  %v1288_v32 = vmul.f32 %v1215_v53, %v3383_v57  ;;  %895 = vst.msk [vmem:[#allocation2 + $0x78] sm:$0xff] %vm445_vm5, %v2424_v24  ;;  %v1419_v47 = vmul.f32 %v1415_v49, %v1406_v4  ;;  %v1539_v31 = vld [vmem:[#allocation3 + $0x88] sm:$0xff]  ;;  %v1424_v57 = vld [vmem:[#allocation3 + $0xb0] sm:$0xff]  ;;  %v1871_v34 = vrot.slane %v3395_v62, 3 }
 0x4da   :  { %1410 = vst.msk [vmem:[#allocation3 + $0xa0] sm:$0xff] %vm445_vm5, %v1406_v4  ;;  %v1698_v39 = vmul.f32 %v3202_v30, %v1538_v14  ;;  %1327 = vst.msk [vmem:[#allocation3 + $0x58] sm:$0xff] %vm445_vm5, %v1295_v58  ;;  %v3456_v37 = vrot.slane %v1154_v8, %v3028_v5  ;;  %v1290_v59 = vmul.f32 %v1219_v55, %v955_v38  ;;  %v1348_v53 = vld [vmem:[#allocation2] sm:$0xff]  ;;  %v1459_v41 = vld [vmem:[#allocation2 + $0xd0] sm:$0xff]  ;;  %v1876_v51 = vrot.slane %v3426_v27, 1 }
 0x4db   :  { %1317 = vst.msk [vmem:[#allocation3 + $0x8] sm:$0xff] %vm445_vm5, %v1285_v17  ;;  %v1420_v20 = vmul.f32 %v1416_v6, %v1407_v11  ;;  %1411 = vst.msk [vmem:[#allocation3 + $0xa8] sm:$0xff] %vm445_vm5, %v1407_v11  ;;  %v1699_v16 = vmul.f32 %v3134_v45, %v1539_v31  ;;  %v1297_v13 = vmul.f32 %v3446_v42, %v3333_v1  ;;  %v979_v45 = vpop.permute.xlu1 %978  ;;  %v1437_v1 = vld [vmem:[#allocation2 + $0xc0] sm:$0xff]  ;;  %v1540_v15 = vld [vmem:[#allocation3 + $0x90] sm:$0xff]  ;;  %v1352_v40 = vmul.f32 0.0, %v1348_v53 }
 0x4dc   :  { %1318 = vst.msk [vmem:[#allocation3 + $0x10] sm:$0xff] %vm445_vm5, %v1286_v50  ;;  %1320 = vst.msk [vmem:[#allocation3 + $0x20] sm:$0xff] %vm445_vm5, %v1288_v32  ;;  %v1292_v30 = vmul.f32 %v3408_v21, %v967_v23  ;;  %v1428_v5 = vadd.f32 %v1424_v57, %v1419_v47  ;;  %v1786_v28 = vsel %vm445_vm5, %v1698_v39, 0.0  ;;  %v1299_v2 = vmul.f32 %v3456_v37, %v3354_v52  ;;  %v3472_v21 = vpop.permute.xlu0 %1560  ;;  %v1541_v44 = vld [vmem:[#allocation3 + $0x98] sm:$0xff]  ;;  %v1369_v31 = vld [vmem:[#allocation2 + $0x10] sm:$0xff] }
 0x4dd   :  { %1322 = vst.msk [vmem:[#allocation3 + $0x30] sm:$0xff] %vm445_vm5, %v1290_v59  ;;  %v1429_v12 = vadd.f32 %v1425_v63, %v1420_v20  ;;  %v1787_v38 = vsel %vm445_vm5, %v1699_v16, 0.0  ;;  %1329 = vst.msk [vmem:[#allocation3 + $0x68] sm:$0xff] %vm445_vm5, %v1297_v13  ;;  %v1294_v26 = vmul.f32 %v3421_v56, %v979_v45  ;;  %v1870_v52 = vrot.slane %v3395_v62, 2  ;;  %v1460_v8 = vld [vmem:[#allocation2 + $0xd8] sm:$0xff]  ;;  %v1468_v20 = vld [vmem:[#allocation3 + $0xd0] sm:$0xff] }
 0x4de   :  { %1324 = vst.msk [vmem:[#allocation3 + $0x40] sm:$0xff] %vm445_vm5, %v1292_v30  ;;  %1432 = vst.msk [vmem:[#allocation3 + $0xb0] sm:$0xff] %vm445_vm5, %v1428_v5  ;;  %v1441_v10 = vmul.f32 %v1437_v1, %v1428_v5  ;;  %v1700_v55 = vmul.f32 %v3161_v25, %v1540_v15  ;;  %v3479_v7 = vadd.f32 %v1787_v38, %v1786_v28  ;;  %v1447_v25 = vld [vmem:[#allocation3 + $0xc8] sm:$0xff]  ;;  %v1353_v24 = vmul.f32 0.0, %v1349_v61  ;;  %v3760_v57 = vld [vmem:[#allocation39_spill] sm:$0xff] }
 0x4df   :  { %1331 = vst.msk [vmem:[#allocation3 + $0x78] sm:$0xff] %vm445_vm5, %v1299_v2  ;;  %1433 = vst.msk [vmem:[#allocation3 + $0xb8] sm:$0xff] %vm445_vm5, %v1429_v12  ;;  %v1442_v36 = vmul.f32 %v1438_v43, %v1429_v12  ;;  %v1701_v56 = vmul.f32 %v3119_v22, %v1541_v44  ;;  %v1356_v0 = vld [vmem:[#allocation3] sm:$0xff]  ;;  %v991_v58 = vpop.permute.xlu1 %990  ;;  %v1877_v6 = vrot.slane %v3426_v27, 2  ;;  %v1469_v30 = vld [vmem:[#allocation3 + $0xd8] sm:$0xff] }
 0x4e0   :  { %1326 = vst.msk [vmem:[#allocation3 + $0x50] sm:$0xff] %vm445_vm5, %v1294_v26  ;;  %v1450_v54 = vadd.f32 %v1446_v29, %v1441_v10  ;;  %v1795_v60 = vsel %vm445_vm5, %v1700_v55, 0.0  ;;  %v1360_v4 = vadd.f32 %v1356_v0, %v1352_v40  ;;  %v1296_v49 = vmul.f32 %v3446_v42, %v991_v58  ;;  %v3497_v13 = vpop.permute.xlu0 %1584  ;;  %v1481_v5 = vld [vmem:[#allocation2 + $0xe0] sm:$0xff]  ;;  %v1370_v45 = vld [vmem:[#allocation2 + $0x18] sm:$0xff]  ;;  %v1482_v38 = vld [vmem:[#allocation2 + $0xe8] sm:$0xff] }
 0x4e1   :  { %v1451_v17 = vadd.f32 %v1447_v25, %v1442_v36  ;;  %v1796_v22 = vsel %vm445_vm5, %v1701_v56, 0.0  ;;  %v1542_v23 = vld [vmem:[#allocation3 + $0xa0] sm:$0xff]  ;;  %v1789_v2 = vrot.slane %v3479_v7, 4  ;;  %v1379_v56 = vld [vmem:[#allocation3 + $0x18] sm:$0xff] }
 0x4e2   :  { %v1357_v11 = vld [vmem:[#allocation3 + $0x8] sm:$0xff]  ;;  %1454 = vst.msk [vmem:[#allocation3 + $0xc0] sm:$0xff] %vm445_vm5, %v1450_v54  ;;  %v1463_v14 = vmul.f32 %v1459_v41, %v1450_v54  ;;  %v1797_v32 = vadd.f32 %v1796_v22, %v1795_v60  ;;  %v1702_v47 = vmul.f32 %v3183_v3, %v1542_v23  ;;  %1364 = vst.msk [vmem:[#allocation3] sm:$0xff] %vm445_vm5, %v1360_v4  ;;  %v1391_v44 = vld [vmem:[#allocation2 + $0x20] sm:$0xff] }
 0x4e3   :  { %v1543_v50 = vld [vmem:[#allocation3 + $0xa8] sm:$0xff]  ;;  %v1378_v39 = vld [vmem:[#allocation3 + $0x10] sm:$0xff]  ;;  %1455 = vst.msk [vmem:[#allocation3 + $0xc8] sm:$0xff] %vm445_vm5, %v1451_v17  ;;  %v1464_v59 = vmul.f32 %v1460_v8, %v1451_v17  ;;  %v1361_v42 = vadd.f32 %v1357_v11, %v1353_v24  ;;  %v1373_v53 = vmul.f32 %v1369_v31, %v1360_v4  ;;  %1328 = vst.msk [vmem:[#allocation3 + $0x60] sm:$0xff] %vm445_vm5, %v1296_v49  ;;  %v3502_v12 = vpop.permute.xlu1 %1002 }
 0x4e4   :  { %v1703_v16 = vmul.f32 %v3760_v57, %v1543_v50  ;;  %v1472_v63 = vadd.f32 %v1468_v20, %v1463_v14  ;;  %v1798_v3 = vrot.slane %v1797_v32, 4  ;;  %v1804_v28 = vsel %vm445_vm5, %v1702_v47, 0.0  ;;  %v1400_v0 = vld [vmem:[#allocation3 + $0x20] sm:$0xff]  ;;  %v3761_v41 = vld [vmem:[#allocation40_spill] sm:$0xff]  ;;  %v1491_v17 = vld [vmem:[#allocation3 + $0xe8] sm:$0xff] }
 0x4e5   :  { %v1473_v1 = vadd.f32 %v1469_v30, %v1464_v59  ;;  %v1544_v26 = vld [vmem:[#allocation3 + $0xb0] sm:$0xff]  ;;  %1365 = vst.msk [vmem:[#allocation3 + $0x8] sm:$0xff] %vm445_vm5, %v1361_v42  ;;  %v1374_v43 = vmul.f32 %v1370_v45, %v1361_v42  ;;  %v1382_v10 = vadd.f32 %v1378_v39, %v1373_v53  ;;  %v1490_v54 = vld [vmem:[#allocation3 + $0xe0] sm:$0xff]  ;;  %v1392_v11 = vld [vmem:[#allocation2 + $0x28] sm:$0xff]  ;;  %v3516_v39 = vpop.permute.xlu0 %1592 }
 0x4e6   :  { %v1805_v15 = vsel %vm445_vm5, %v1703_v16, 0.0  ;;  %1476 = vst.msk [vmem:[#allocation3 + $0xd0] sm:$0xff] %vm445_vm5, %v1472_v63  ;;  %v1485_v55 = vmul.f32 %v1481_v5, %v1472_v63  ;;  %v1545_v40 = vld [vmem:[#allocation3 + $0xb8] sm:$0xff]  ;;  %v1799_v61 = vadd.f32 %v1798_v3, %v1797_v32  ;;  %v1704_v29 = vmul.f32 %v3209_v35, %v1544_v26  ;;  %v1503_v14 = vld [vmem:[#allocation2 + $0xf0] sm:$0xff]  ;;  %v1401_v30 = vld [vmem:[#allocation3 + $0x28] sm:$0xff] }
 0x4e7   :  { %v1806_v36 = vadd.f32 %v1805_v15, %v1804_v28  ;;  %1477 = vst.msk [vmem:[#allocation3 + $0xd8] sm:$0xff] %vm445_vm5, %v1473_v1  ;;  %v1486_v25 = vmul.f32 %v1482_v38, %v1473_v1  ;;  %v1705_v60 = vmul.f32 %v3761_v41, %v1545_v40  ;;  %v1383_v4 = vadd.f32 %v1379_v56, %v1374_v43  ;;  %v3512_v35 = vpop.permute.xlu1 %1564  ;;  %v1504_v59 = vld [vmem:[#allocation2 + $0xf8] sm:$0xff]  ;;  %v1512_v5 = vld [vmem:[#allocation3 + $0xf0] sm:$0xff]  ;;  %v3762_v3 = vld [vmem:[#allocation41_spill] sm:$0xff] }
 0x4e8   :  { %1386 = vst.msk [vmem:[#allocation3 + $0x10] sm:$0xff] %vm445_vm5, %v1382_v10  ;;  %v1395_v58 = vmul.f32 %v1391_v44, %v1382_v10  ;;  %v1494_v8 = vadd.f32 %v1490_v54, %v1485_v55  ;;  %v1800_v22 = vrot.slane %v1799_v61, 2  ;;  %v1813_v24 = vsel %vm445_vm5, %v1704_v29, 0.0  ;;  %v1513_v38 = vld [vmem:[#allocation3 + $0xf8] sm:$0xff]  ;;  %v1413_v41 = vld [vmem:[#allocation2 + $0x30] sm:$0xff] }
 0x4e9   :  { %v1807_v23 = vrot.slane %v1806_v36, 4  ;;  %v1495_v49 = vadd.f32 %v1491_v17, %v1486_v25  ;;  %v1814_v50 = vsel %vm445_vm5, %v1705_v60, 0.0  ;;  %v1546_v32 = vld [vmem:[#allocation3 + $0xc0] sm:$0xff]  ;;  %1387 = vst.msk [vmem:[#allocation3 + $0x18] sm:$0xff] %vm445_vm5, %v1383_v4  ;;  %v1396_v47 = vmul.f32 %v1392_v11, %v1383_v4  ;;  %v1414_v44 = vld [vmem:[#allocation2 + $0x38] sm:$0xff]  ;;  %v3534_v11 = vpop.permute.xlu0 %1600 }
 0x4ea   :  { %v1404_v31 = vadd.f32 %v1400_v0, %v1395_v58  ;;  %1498 = vst.msk [vmem:[#allocation3 + $0xe0] sm:$0xff] %vm445_vm5, %v1494_v8  ;;  %v1507_v20 = vmul.f32 %v1503_v14, %v1494_v8  ;;  %v1801_v57 = vadd.f32 %v1800_v22, %v1799_v61  ;;  %v1547_v16 = vld [vmem:[#allocation3 + $0xc8] sm:$0xff]  ;;  %v1815_v53 = vadd.f32 %v1814_v50, %v1813_v24  ;;  %v1423_v54 = vld [vmem:[#allocation3 + $0x38] sm:$0xff]  ;;  %v3764_v8 = vld [vmem:[#allocation45_spill] sm:$0xff] }
 0x4eb   :  { %v1808_v42 = vadd.f32 %v1807_v23, %v1806_v36  ;;  %1499 = vst.msk [vmem:[#allocation3 + $0xe8] sm:$0xff] %vm445_vm5, %v1495_v49  ;;  %v1508_v63 = vmul.f32 %v1504_v59, %v1495_v49  ;;  %v1707_v28 = vmul.f32 %v3762_v3, %v1547_v16  ;;  %v1706_v45 = vmul.f32 %v3231_v33, %v1546_v32  ;;  %v3523_v55 = vpop.permute.xlu1 %1572  ;;  %v3763_v58 = vld [vmem:[#allocation42_spill] sm:$0xff]  ;;  %v1422_v59 = vld [vmem:[#allocation3 + $0x30] sm:$0xff] }
 0x4ec   :  { %v1405_v1 = vadd.f32 %v1401_v30, %v1396_v47  ;;  %1408 = vst.msk [vmem:[#allocation3 + $0x20] sm:$0xff] %vm445_vm5, %v1404_v31  ;;  %v1516_v15 = vadd.f32 %v1512_v5, %v1507_v20  ;;  %v1802_v26 = vrot.slane %v1801_v57, 1  ;;  %v1816_v10 = vrot.slane %v1815_v53, 4  ;;  %v1436_v32 = vld [vmem:[#allocation2 + $0x48] sm:$0xff] }
 0x4ed   :  { %v1809_v43 = vrot.slane %v1808_v42, 2  ;;  %v1517_v40 = vadd.f32 %v1513_v38, %v1508_v63  ;;  %v1823_v61 = vsel %vm445_vm5, %v1707_v28, 0.0  ;;  %v1822_v36 = vsel %vm445_vm5, %v1706_v45, 0.0  ;;  %v1548_v29 = vld [vmem:[#allocation3 + $0xd0] sm:$0xff] }
 0x4ee   :  { %v1418_v56 = vmul.f32 %v1414_v44, %v1405_v1  ;;  %1409 = vst.msk [vmem:[#allocation3 + $0x28] sm:$0xff] %vm445_vm5, %v1405_v1  ;;  %1520 = vst.msk [vmem:[#allocation3 + $0xf0] sm:$0xff] %vm445_vm5, %v1516_v15  ;;  %v1549_v0 = vld [vmem:[#allocation3 + $0xd8] sm:$0xff]  ;;  %v1824_v25 = vadd.f32 %v1823_v61, %v1822_v36  ;;  %v1882_v60 = vrot.slane %v3426_v27, 7  ;;  %v1874_v4 = vrot.slane %v3395_v62, 6  ;;  %v1435_v44 = vld [vmem:[#allocation2 + $0x40] sm:$0xff] }
 0x4ef   :  { %v1810_v33 = vadd.f32 %v1809_v43, %v1808_v42  ;;  %1521 = vst.msk [vmem:[#allocation3 + $0xf8] sm:$0xff] %vm445_vm5, %v1517_v40  ;;  %v1709_v17 = vmul.f32 %v3763_v58, %v1549_v0  ;;  %v1708_v22 = vmul.f32 %v3764_v8, %v1548_v29  ;;  %v1417_v24 = vmul.f32 %v1413_v41, %v1404_v31  ;;  %v3541_v20 = vpop.permute.xlu1 %1556  ;;  %v1444_v58 = vld [vmem:[#allocation3 + $0x40] sm:$0xff]  ;;  %v3766_v8 = vld [vmem:[#allocation43_spill] sm:$0xff] }
 0x4f0   :  { %v1427_v23 = vadd.f32 %v1423_v54, %v1418_v56  ;;  %v1803_v49 = vadd.f32 %v1802_v26, %v1801_v57  ;;  %v3539_v50 = vadd.f32 %v1789_v2, %v3479_v7  ;;  %v1525_v47 = vld [vmem:[#allocation3 + $0x18] sm:$0xff]  ;;  %v1872_v16 = vrot.slane %v3395_v62, 4  ;;  %v1445_v7 = vld [vmem:[#allocation3 + $0x48] sm:$0xff] }
 0x4f1   :  { %v1811_v14 = vrot.slane %v1810_v33, 1  ;;  %v1832_v42 = vsel %vm445_vm5, %v1709_v17, 0.0  ;;  %v3545_v30 = vadd.f32 %v1816_v10, %v1815_v53  ;;  %v1831_v31 = vsel %vm445_vm5, %v1708_v22, 0.0  ;;  %v1550_v5 = vld [vmem:[#allocation3 + $0xe0] sm:$0xff]  ;;  %v1458_v10 = vld [vmem:[#allocation2 + $0x58] sm:$0xff]  ;;  %v3566_v17 = vpop.permute.xlu0 %1608 }
 0x4f2   :  { %1431 = vst.msk [vmem:[#allocation3 + $0x38] sm:$0xff] %vm445_vm5, %v1427_v23  ;;  %v1440_v57 = vmul.f32 %v1436_v32, %v1427_v23  ;;  %v1825_v63 = vrot.slane %v1824_v25, 4  ;;  %v1878_v2 = vrot.slane %v3426_v27, 3  ;;  %v1879_v3 = vrot.slane %v3426_v27, 4  ;;  %v1551_v1 = vld [vmem:[#allocation3 + $0xe8] sm:$0xff] }
 0x4f3   :  { %v1880_v28 = vrot.slane %v3426_v27, 5  ;;  %v1812_v45 = vadd.f32 %v1811_v14, %v1810_v33  ;;  %v1685_v53 = vmul.f32 %v3391_v9, %v1525_v47  ;;  %v1426_v15 = vadd.f32 %v1422_v59, %v1417_v24  ;;  %v3554_v40 = vpop.permute.xlu1 %1580  ;;  %v3765_v33 = vld [vmem:[#allocation46_spill] sm:$0xff]  ;;  %v3767_v47 = vld [vmem:[#allocation44_spill] sm:$0xff] }
 0x4f4   :  { %v1449_v38 = vadd.f32 %v1445_v7, %v1440_v57  ;;  %v1791_v26 = vrot.slane %v3539_v50, 2  ;;  %v1833_v43 = vadd.f32 %v1832_v42, %v1831_v31  ;;  %v1881_v61 = vrot.slane %v3426_v27, 6  ;;  %v1523_v57 = vld [vmem:[#allocation3 + $0x8] sm:$0xff] }
 0x4f5   :  { %v1875_v36 = vrot.slane %v3395_v62, 7  ;;  %v3560_v29 = vadd.f32 %v1876_v51, %v1803_v49  ;;  %v1818_v56 = vrot.slane %v3545_v30, 2  ;;  %v1710_v9 = vmul.f32 %v3765_v33, %v1550_v5  ;;  %v1552_v0 = vld [vmem:[#allocation3 + $0xf0] sm:$0xff]  ;;  %v1527_v41 = vld [vmem:[#allocation3 + $0x28] sm:$0xff]  ;;  %1430 = vst.msk [vmem:[#allocation3 + $0x30] sm:$0xff] %vm445_vm5, %v1426_v15  ;;  %v1467_v49 = vld [vmem:[#allocation3 + $0x58] sm:$0xff] }
 0x4f6   :  { %v1462_v54 = vmul.f32 %v1458_v10, %v1449_v38  ;;  %1453 = vst.msk [vmem:[#allocation3 + $0x48] sm:$0xff] %vm445_vm5, %v1449_v38  ;;  %v1711_v22 = vmul.f32 %v3766_v8, %v1551_v1  ;;  %v1553_v23 = vld [vmem:[#allocation3 + $0xf8] sm:$0xff]  ;;  %v3569_v24 = vadd.f32 %v1825_v63, %v1824_v25  ;;  %v1712_v51 = vmul.f32 %v3280_v18, %v1552_v0  ;;  %v1480_v1 = vld [vmem:[#allocation2 + $0x68] sm:$0xff]  ;;  %v1466_v10 = vld [vmem:[#allocation3 + $0x50] sm:$0xff] }
 0x4f7   :  { %v1439_v14 = vmul.f32 %v1435_v44, %v1426_v15  ;;  %v3574_v32 = vadd.f32 %v1877_v6, %v1812_v45  ;;  %v1713_v59 = vmul.f32 %v3767_v47, %v1553_v23  ;;  %v1724_v31 = vsel %vm445_vm5, %v1685_v53, 0.0  ;;  %v3580_v18 = vpop.permute.xlu1 %1588  ;;  %v1457_v15 = vld [vmem:[#allocation2 + $0x50] sm:$0xff]  ;;  %v1489_v0 = vld [vmem:[#allocation3 + $0x68] sm:$0xff] }
 0x4f8   :  { %v1471_v42 = vadd.f32 %v1467_v49, %v1462_v54  ;;  %v1834_v5 = vrot.slane %v1833_v43, 4  ;;  %v1849_v7 = vsel %vm445_vm5, %v1712_v51, 0.0  ;;  %v1687_v25 = vmul.f32 %v3435_v48, %v1527_v41  ;;  %v1524_v44 = vld [vmem:[#allocation3 + $0x10] sm:$0xff]  ;;  %v3592_v51 = vpop.permute.xlu0 %1616 }
 0x4f9   :  { %v1448_v63 = vadd.f32 %v1444_v58, %v1439_v14  ;;  %v1850_v38 = vsel %vm445_vm5, %v1713_v59, 0.0  ;;  %v1840_v6 = vsel %vm445_vm5, %v1710_v9, 0.0  ;;  %v1298_v53 = vmul.f32 %v3456_v37, %v3502_v12  ;;  %v1529_v54 = vld [vmem:[#allocation3 + $0x38] sm:$0xff]  ;;  %v1526_v58 = vld [vmem:[#allocation3 + $0x20] sm:$0xff] }
 0x4fa   :  { %v1484_v45 = vmul.f32 %v1480_v1, %v1471_v42  ;;  %1475 = vst.msk [vmem:[#allocation3 + $0x58] sm:$0xff] %vm445_vm5, %v1471_v42  ;;  %v1841_v33 = vsel %vm445_vm5, %v1711_v22, 0.0  ;;  %v1683_v48 = vmul.f32 %v3472_v21, %v1523_v57  ;;  %v1684_v9 = vmul.f32 %v3512_v35, %v1524_v44  ;;  %v1502_v21 = vld [vmem:[#allocation2 + $0x78] sm:$0xff]  ;;  %v1488_v57 = vld [vmem:[#allocation3 + $0x60] sm:$0xff] }
 0x4fb   :  { %1452 = vst.msk [vmem:[#allocation3 + $0x40] sm:$0xff] %vm445_vm5, %v1448_v63  ;;  %v1461_v41 = vmul.f32 %v1457_v15, %v1448_v63  ;;  %v1851_v8 = vadd.f32 %v1850_v38, %v1849_v7  ;;  %1330 = vst.msk [vmem:[#allocation3 + $0x70] sm:$0xff] %vm445_vm5, %v1298_v53  ;;  %v1686_v37 = vmul.f32 %v3523_v55, %v1526_v58  ;;  %v1733_v49 = vsel %vm445_vm5, %v1687_v25, 0.0  ;;  %v3600_v47 = vpop.permute.xlu1 %1596  ;;  %v1479_v55 = vld [vmem:[#allocation2 + $0x60] sm:$0xff]  ;;  %v3769_v58 = vld [vmem:[#allocation36_spill] sm:$0xff] }
 0x4fc   :  { %v1493_v23 = vadd.f32 %v1489_v0, %v1484_v45  ;;  %v1792_v12 = vadd.f32 %v1791_v26, %v3539_v50  ;;  %v3596_v22 = vadd.f32 %v1834_v5, %v1833_v43  ;;  %v1723_v35 = vsel %vm445_vm5, %v1684_v9, 0.0  ;;  %v1511_v5 = vld [vmem:[#allocation3 + $0x78] sm:$0xff] }
 0x4fd   :  { %v1470_v14 = vadd.f32 %v1466_v10, %v1461_v41  ;;  %v1689_v42 = vmul.f32 %v3497_v13, %v1529_v54  ;;  %v1725_v50 = vadd.f32 %v1724_v31, %v1723_v35  ;;  %v1732_v26 = vsel %vm445_vm5, %v1686_v37, 0.0  ;;  %v1531_v7 = vld [vmem:[#allocation3 + $0x48] sm:$0xff]  ;;  %v3768_v10 = vld [vmem:[#allocation33_spill] sm:$0xff]  ;;  %v1501_v41 = vld [vmem:[#allocation2 + $0x70] sm:$0xff]  ;;  %v1962_v37 = vpop.permute.xlu0 %1961 }
 0x4fe   :  { %1497 = vst.msk [vmem:[#allocation3 + $0x68] sm:$0xff] %vm445_vm5, %v1493_v23  ;;  %v1506_v59 = vmul.f32 %v1502_v21, %v1493_v23  ;;  %v3605_v43 = vadd.f32 %v1841_v33, %v1840_v6  ;;  %v1734_v25 = vadd.f32 %v1733_v49, %v1732_v26  ;;  %v1793_v63 = vrot.slane %v1792_v12, 1  ;;  %v1528_v35 = vld [vmem:[#allocation3 + $0x30] sm:$0xff] }
 0x4ff   :  { %1474 = vst.msk [vmem:[#allocation3 + $0x50] sm:$0xff] %vm445_vm5, %v1470_v14  ;;  %v1483_v1 = vmul.f32 %v1479_v55, %v1470_v14  ;;  %v1852_v38 = vrot.slane %v1851_v8, 4  ;;  %v1726_v15 = vrot.slane %v1725_v50, 4  ;;  %v2002_v13 = vmul.f32 %v3768_v10, %v3560_v29  ;;  %v3611_v6 = vpop.permute.xlu1 %1604  ;;  %v1522_v29 = vld [vmem:[#allocation3] sm:$0xff] }
 0x500   :  { %v1515_v45 = vadd.f32 %v1511_v5, %v1506_v59  ;;  %v1715_v53 = vsel %vm445_vm5, %v1683_v48, 0.0  ;;  %v1735_v44 = vrot.slane %v1734_v25, 4  ;;  %v1794_v0 = vadd.f32 %v1793_v63, %v1792_v12 }
 0x501   :  { %v1492_v31 = vadd.f32 %v1488_v57, %v1483_v1  ;;  %v1742_v33 = vsel %vm445_vm5, %v1689_v42, 0.0  ;;  %v1691_v54 = vmul.f32 %v3516_v39, %v1531_v7  ;;  %v1727_v9 = vadd.f32 %v1726_v15, %v1725_v50  ;;  %v1533_v57 = vld [vmem:[#allocation3 + $0x58] sm:$0xff] }
 0x502   :  { %1519 = vst.msk [vmem:[#allocation3 + $0x78] sm:$0xff] %vm445_vm5, %v1515_v45  ;;  %v2003_v23 = vmul.f32 %v3769_v58, %v3574_v32  ;;  %v1510_v21 = vld [vmem:[#allocation3 + $0x70] sm:$0xff]  ;;  %v1736_v12 = vadd.f32 %v1735_v44, %v1734_v25  ;;  %v1907_v49 = vadd.f32 %v3426_v27, %v1794_v0  ;;  %v1682_v14 = vmul.f32 %v3541_v20, %v1522_v29  ;;  %v1530_v15 = vld [vmem:[#allocation3 + $0x40] sm:$0xff] }
 0x503   :  { %1496 = vst.msk [vmem:[#allocation3 + $0x60] sm:$0xff] %vm445_vm5, %v1492_v31  ;;  %v1505_v48 = vmul.f32 %v1501_v41, %v1492_v31  ;;  %v1853_v59 = vadd.f32 %v1852_v38, %v1851_v8  ;;  %v1728_v42 = vrot.slane %v1727_v9, 2  ;;  %v2054_v39 = vrot.slane %v2002_v13, 7  ;;  %v1613_v7 = vpop.permute.xlu1 %1612 }
 0x504   :  { %v1688_v55 = vmul.f32 %v3554_v40, %v1528_v35  ;;  %v1737_v32 = vrot.slane %v1736_v12, 2  ;;  %v2001_v26 = vmul.f32 %v1962_v37, %v1907_v49  ;;  %v1714_v5 = vsel %vm445_vm5, %v1682_v14, 0.0 }
 0x505   :  { %v1514_v50 = vadd.f32 %v1510_v21, %v1505_v48  ;;  %v1729_v1 = vadd.f32 %v1728_v42, %v1727_v9  ;;  %v2056_v63 = vrot.slane %v2003_v23, 6  ;;  %v1716_v25 = vadd.f32 %v1715_v53, %v1714_v5 }
 0x506   :  { %v1741_v45 = vsel %vm445_vm5, %v1688_v55, 0.0  ;;  %v1738_v20 = vadd.f32 %v1737_v32, %v1736_v12  ;;  %v2055_v8 = vsel %vm2034_vm8, %v2054_v39, %v2001_v26  ;;  %v1690_v40 = vmul.f32 %v3580_v18, %v1530_v15  ;;  %v1532_v53 = vld [vmem:[#allocation3 + $0x50] sm:$0xff]  ;;  %v1535_v18 = vld [vmem:[#allocation3 + $0x68] sm:$0xff]  ;;  %v3644_v15 = vpop.permute.xlu0 %1955 }
 0x507   :  { %1518 = vst.msk [vmem:[#allocation3 + $0x70] sm:$0xff] %vm445_vm5, %v1514_v50  ;;  %v1743_v38 = vadd.f32 %v1742_v33, %v1741_v45  ;;  %v1751_v10 = vsel %vm445_vm5, %v1691_v54, 0.0  ;;  %v1693_v13 = vmul.f32 %v3534_v11, %v1533_v57  ;;  %v3630_v31 = vsel %vm2037_vm9, %v2056_v63, %v2055_v8  ;;  %v3636_v29 = vpop.permute.xlu1 %1953 }
 0x508   :  { %v1717_v44 = vrot.slane %v1716_v25, 4  ;;  %v1730_v0 = vrot.slane %v1729_v1, 1  ;;  %v1750_v9 = vsel %vm445_vm5, %v1690_v40, 0.0  ;;  %v1692_v58 = vmul.f32 %v3600_v47, %v1532_v53 }
 0x509   :  { %v1744_v41 = vrot.slane %v1743_v38, 4  ;;  %v1827_v23 = vrot.slane %v3569_v24, 2  ;;  %v1836_v33 = vrot.slane %v3596_v22, 2  ;;  %v1752_v54 = vadd.f32 %v1751_v10, %v1750_v9  ;;  %v1537_v48 = vld [vmem:[#allocation3 + $0x78] sm:$0xff] }
 0x50a   :  { %v1718_v37 = vadd.f32 %v1717_v44, %v1716_v25  ;;  %v1854_v11 = vrot.slane %v1853_v59, 2  ;;  %v1739_v21 = vrot.slane %v1738_v20, 1  ;;  %v1759_v49 = vsel %vm445_vm5, %v1692_v58, 0.0  ;;  %v1534_v32 = vld [vmem:[#allocation3 + $0x60] sm:$0xff] }
 0x50b   :  { %v1745_v12 = vadd.f32 %v1744_v41, %v1743_v38  ;;  %v1843_v14 = vrot.slane %v3605_v43, 4  ;;  %v1760_v35 = vsel %vm445_vm5, %v1693_v13, 0.0  ;;  %v1753_v42 = vrot.slane %v1752_v54, 4  ;;  %v1968_v44 = vpop.permute.xlu1 %1967 }
 0x50c   :  { %v1719_v47 = vrot.slane %v1718_v37, 2  ;;  %v1695_v39 = vmul.f32 %v3566_v17, %v1535_v18  ;;  %v1731_v55 = vadd.f32 %v1730_v0, %v1729_v1  ;;  %v1761_v50 = vadd.f32 %v1760_v35, %v1759_v49  ;;  %v3661_v35 = vpop.permute.xlu0 %1957 }
 0x50d   :  { %v1746_v57 = vrot.slane %v1745_v12, 2  ;;  %v1697_v26 = vmul.f32 %v3592_v51, %v1537_v48  ;;  %v1754_v63 = vadd.f32 %v1753_v42, %v1752_v54  ;;  %v1694_v25 = vmul.f32 %v3611_v6, %v1534_v32 }
 0x50e   :  { %v1720_v5 = vadd.f32 %v1719_v47, %v1718_v37  ;;  %v1740_v45 = vadd.f32 %v1739_v21, %v1738_v20  ;;  %v1762_v38 = vrot.slane %v1761_v50, 4  ;;  %v1855_v40 = vadd.f32 %v1854_v11, %v1853_v59  ;;  %v1536_v0 = vld [vmem:[#allocation3 + $0x70] sm:$0xff] }
 0x50f   :  { %v1747_v8 = vadd.f32 %v1746_v57, %v1745_v12  ;;  %v3647_v10 = vadd.f32 %v1843_v14, %v3605_v43  ;;  %v1755_v1 = vrot.slane %v1754_v63, 2  ;;  %v1768_v13 = vsel %vm445_vm5, %v1694_v25, 0.0  ;;  %v3770_v12 = vld [vmem:[#allocation35_spill] sm:$0xff]  ;;  %v1970_v57 = vpop.permute.xlu1 %1969 }
 0x510   :  { %v1721_v17 = vrot.slane %v1720_v5, 1  ;;  %v1769_v51 = vsel %vm445_vm5, %v1695_v39, 0.0  ;;  %v1900_v53 = vadd.f32 %v1869_v19, %v1731_v55  ;;  %v1763_v20 = vadd.f32 %v1762_v38, %v1761_v50  ;;  %v3771_v50 = vld [vmem:[#allocation38_spill] sm:$0xff] }
 0x511   :  { %v1748_v6 = vrot.slane %v1747_v8, 1  ;;  %v1778_v41 = vsel %vm445_vm5, %v1697_v26, 0.0  ;;  %v1770_v9 = vadd.f32 %v1769_v51, %v1768_v13  ;;  %v1696_v59 = vmul.f32 %v1613_v7, %v1536_v0  ;;  %v3772_v0 = vld [vmem:[#allocation34_spill] sm:$0xff] }
 0x512   :  { %v1756_v58 = vadd.f32 %v1755_v1, %v1754_v63  ;;  %v1901_v43 = vadd.f32 %v1870_v52, %v1740_v45  ;;  %v1764_v18 = vrot.slane %v1763_v20, 2  ;;  %v1856_v37 = vrot.slane %v1855_v40, 1 }
 0x513   :  { %v1819_v54 = vadd.f32 %v1818_v56, %v3545_v30  ;;  %v1722_v11 = vadd.f32 %v1721_v17, %v1720_v5  ;;  %v1771_v48 = vrot.slane %v1770_v9, 4  ;;  %v1777_v19 = vsel %vm445_vm5, %v1696_v59, 0.0 }
 0x514   :  { %v1757_v21 = vrot.slane %v1756_v58, 1  ;;  %v1994_v49 = vmul.f32 %v3770_v12, %v1900_v53  ;;  %v1749_v14 = vadd.f32 %v1748_v6, %v1747_v8  ;;  %v1765_v7 = vadd.f32 %v1764_v18, %v1763_v20 }
 0x515   :  { %v1779_v47 = vadd.f32 %v1778_v41, %v1777_v19  ;;  %v1845_v52 = vrot.slane %v3647_v10, 2  ;;  %v1772_v42 = vadd.f32 %v1771_v48, %v1770_v9  ;;  %v1820_v55 = vrot.slane %v1819_v54, 1 }
 0x516   :  { %v1758_v39 = vadd.f32 %v1757_v21, %v1756_v58  ;;  %v3665_v30 = vmul.f32 %v3771_v50, %v1901_v43  ;;  %v1766_v56 = vrot.slane %v1765_v7, 1  ;;  %v1828_v26 = vadd.f32 %v1827_v23, %v3569_v24  ;;  %v1960_v23 = vpop.permute.xlu0 %1959  ;;  %v3773_v43 = vld [vmem:[#allocation37_spill] sm:$0xff] }
 0x517   :  { %v1780_v32 = vrot.slane %v1779_v47, 4  ;;  %v1899_v5 = vadd.f32 %v3395_v62, %v1722_v11  ;;  %v1857_v63 = vadd.f32 %v1856_v37, %v1855_v40  ;;  %v1773_v25 = vrot.slane %v1772_v42, 2 }
 0x518   :  { %v1821_v45 = vadd.f32 %v1820_v55, %v1819_v54  ;;  %v2033_v8 = vrot.slane %v1994_v49, 7  ;;  %v1902_v38 = vadd.f32 %v1871_v34, %v1749_v14  ;;  %v1767_v17 = vadd.f32 %v1766_v56, %v1765_v7 }
 0x519   :  { %v1781_v1 = vadd.f32 %v1780_v32, %v1779_v47  ;;  %v1774_v13 = vadd.f32 %v1773_v25, %v1772_v42  ;;  %v1903_v51 = vadd.f32 %v1872_v16, %v1758_v39  ;;  %v1829_v6 = vrot.slane %v1828_v26, 1 }
 0x51a   :  { %v1910_v53 = vadd.f32 %v1878_v2, %v1821_v45  ;;  %v2036_v24 = vrot.slane %v3665_v30, 6  ;;  %v1904_v40 = vadd.f32 %v1873_v46, %v1767_v17  ;;  %v1837_v34 = vadd.f32 %v1836_v33, %v3596_v22  ;;  %v1972_v2 = vpop.permute.xlu1 %1971  ;;  %v1976_v7 = vpop.permute.xlu0 %1975 }
 0x51b   :  { %v1782_v20 = vrot.slane %v1781_v1, 2  ;;  %v1993_v41 = vmul.f32 %v3772_v0, %v1899_v5  ;;  %v1775_v9 = vrot.slane %v1774_v13, 1  ;;  %v1830_v59 = vadd.f32 %v1829_v6, %v1828_v26 }
 0x51c   :  { %v2004_v16 = vmul.f32 %v1968_v44, %v1910_v53  ;;  %v1996_v18 = vmul.f32 %v3773_v43, %v1902_v38  ;;  %v1838_v37 = vrot.slane %v1837_v34, 1  ;;  %v1846_v54 = vadd.f32 %v1845_v52, %v3647_v10 }
 0x51d   :  { %v1783_v58 = vadd.f32 %v1782_v20, %v1781_v1  ;;  %v1776_v46 = vadd.f32 %v1775_v9, %v1774_v13  ;;  %v1997_v11 = vmul.f32 %v3636_v29, %v1903_v51  ;;  %v1911_v22 = vadd.f32 %v1879_v3, %v1830_v59  ;;  %v2425_v51 = vld [vmem:[#allocation4 + $0x8] sm:$0xff] }
 0x51e   :  { %v2058_v48 = vrot.slane %v2004_v16, 5  ;;  %v1998_v19 = vmul.f32 %v3644_v15, %v1904_v40  ;;  %v1839_v44 = vadd.f32 %v1838_v37, %v1837_v34  ;;  %v1847_v21 = vrot.slane %v1846_v54, 1  ;;  %v1974_v55 = vpop.permute.xlu1 %1973 }
 0x51f   :  { %v1784_v33 = vrot.slane %v1783_v58, 1  ;;  %v1905_v12 = vadd.f32 %v1874_v4, %v1776_v46  ;;  %v2035_v49 = vsel %vm2034_vm8, %v2033_v8, %v1993_v41  ;;  %v2005_v14 = vmul.f32 %v1970_v57, %v1911_v22 }
 0x520   :  { %v2059_v10 = vsel %vm2040_vm10, %v2058_v48, %v3630_v31  ;;  %v2039_v47 = vrot.slane %v1996_v18, 5  ;;  %v1912_v3 = vadd.f32 %v1880_v28, %v1839_v44  ;;  %v1848_v52 = vadd.f32 %v1847_v21, %v1846_v54 }
 0x521   :  { %v1785_v29 = vadd.f32 %v1784_v33, %v1783_v58  ;;  %v1914_v15 = vadd.f32 %v1882_v60, %v1857_v63  ;;  %v2042_v42 = vrot.slane %v1997_v11, 4  ;;  %v2060_v39 = vrot.slane %v2005_v14, 4 }
 0x522   :  { %v1999_v4 = vmul.f32 %v3661_v35, %v1905_v12  ;;  %v2045_v50 = vrot.slane %v1998_v19, 3  ;;  %v2006_v30 = vmul.f32 %v1972_v2, %v1912_v3  ;;  %v1913_v31 = vadd.f32 %v1881_v61, %v1848_v52 }
 0x523   :  { %v1906_v57 = vadd.f32 %v1875_v36, %v1785_v29  ;;  %v2008_v56 = vmul.f32 %v1976_v7, %v1914_v15  ;;  %v2038_v28 = vsel %vm2037_vm9, %v2036_v24, %v2035_v49  ;;  %v2061_v32 = vsel %vm2043_vm11, %v2060_v39, %v2059_v10  ;;  %v2426_v24 = vld [vmem:[#allocation4] sm:$0xff] }
 0x524   :  { %v2048_v26 = vrot.slane %v1999_v4, 2  ;;  %v2041_v60 = vsel %vm2040_vm10, %v2039_v47, %v2038_v28  ;;  %v2062_v5 = vrot.slane %v2006_v30, 3  ;;  %v2007_v63 = vmul.f32 %v1974_v55, %v1913_v31 }
 0x525   :  { %v2000_v25 = vmul.f32 %v1960_v23, %v1906_v57  ;;  %v2044_v35 = vsel %vm2043_vm11, %v2042_v42, %v2041_v60  ;;  %v2066_v45 = vrot.slane %v2008_v56, 1 }
 0x526   :  { %v2047_v27 = vsel %vm2046_vm12, %v2045_v50, %v2044_v35  ;;  %v2063_v61 = vsel %vm2046_vm12, %v2062_v5, %v2061_v32  ;;  %v2064_v62 = vrot.slane %v2007_v63, 2 }
 0x527   :  { %v2051_v36 = vrot.slane %v2000_v25, 1  ;;  %v2050_v8 = vsel %vm2049_vm13, %v2048_v26, %v2047_v27 }
 0x528   :  { %v2065_v38 = vsel %vm2049_vm13, %v2064_v62, %v2063_v61 }
 0x529   :  { %v2053_v17 = vsel %vm2052_vm14, %v2051_v36, %v2050_v8  ;;  %v2067_v1 = vsel %vm2052_vm14, %v2066_v45, %v2065_v38 }
 0x52a   :  { %2267 = vmatprep.mubr.msk.f32.mxu0 %vm445_vm5, %v2053_v17 }
 0x52b   :  { %2268 = vmatmul.mubr.msk.f32.vlgmr.msra.gmra.mrb[2].mxu0 %vm445_vm5, %v2067_v1 }
 0x5fe   :  { %v2269_v13 = vpop.f32.mrb[2].mxu0 }
 0x5ff   :  { %v2148_v53 = vadd.f32 %v2425_v51, %v2269_v13  ;;  %v2138_v6 = vpop.f32.mrb[3].mxu0 }
 0x600   :  { %v2147_v23 = vadd.f32 %v2426_v24, %v2138_v6 }
 0x601   :  { %2150 = vst.msk [vmem:[#allocation24 + $0x8] sm:$0xff] %vm193_vm0, %v2148_v53 }
 0x602   :  { %2149 = vst.msk [vmem:[#allocation24] sm:$0xff] %vm193_vm0, %v2147_v23 }
 0x603   :  { %2702 = shalt.err (!%p2699_p2)
}
 0x604   :  { %s2703_s27 = scalar_lea.hbm %s3743_s12, 256 }
 0x605   :  { %p2704_p3 = scmp.ne.s32.totalorder %s3743_s12, %s2703_s27  ;;  %p2707_p4 = scmp.lt.u32.totalorder %s2703_s27, %s3743_s12 }
 0x607   :  { %p2709_p5 = pnand %p2707_p4, %p2704_p3 }
 0x609   :  { %2712 = shalt.err (!%p2709_p5)
}
 0x60a   :  { %2162 = dma.vmem_to_hbm [thread:$0]  %s2157_s19, 256, %s3743_s12, [#allocation6], %s2732_s22, %s2732_s22, %s2733_s28  }
 0x60b   :  { %2727 = dma.done.wait [#allocation6], 256  }
 0x60c   :  { %2728 = vsyncadd [#allocation6], 4294967040 }
 0x60d   :  { %2166 = vsyncpa [#allocation5], 1 }
 0x60e   :  { %2167 = vsyncpa [#allocation8], 1 }
 0x60f   :  { %2168 = vsyncpa [#allocation11], 1 }
 0x610   :  { %2169 = vsyncpa [#allocation14], 1 }
 0x611   :  { %2170 = vsyncpa [#allocation17], 1 }
 0x612   :  { %2171 = vsyncpa [#allocation20], 1 }
 0x613   :  { %2172 = vsyncpa [#allocation23], 1 }
 0x614   :  { %2173 = vsyncpa [#allocation6], 1 }

</bundles_post_ra>
